<compile_context>
chip_gen: v5e
topology: v5e:2x2
jax: 0.10.0
libtpu: 0.0.40
codegen_flags: <defaults>
</compile_context>

<pallas_src>
import functools

import jax
import jax.numpy as jnp
from jax.experimental import pallas as pl
from jax.experimental.pallas import tpu as pltpu


# --------------------------- hardware-aware config ----------------------------
@functools.lru_cache(maxsize=None)
def _hw():
    """Generation-aware kernel configuration (no device kernels are run)."""
    kind = ""
    try:
        kind = jax.devices()[0].device_kind.lower()
    except Exception:
        pass
    vmem = None
    try:
        vmem = int(pltpu.get_tpu_info().vmem_capacity_bytes)
    except Exception:
        pass
    if vmem is None:
        vmem = (64 << 20) if ("7" in kind) else (128 << 20)
    small_vmem = vmem <= (64 << 20)              # v7x-class: 64 MiB / TensorCore
    two_cores = small_vmem or ("7x" in kind)     # v7x has 2 TCs per chip
    is_v5 = "v5" in kind
    is_v6 = "v6" in kind
    if small_vmem:                               # v7x: smaller tiles, 2 TCs
        lstm_nb, sf_nb, lin_rows = 64, 32, 1024
    elif is_v5:                                  # v5e: 128-wide MXU rows, low HBM BW
        lstm_nb, sf_nb, lin_rows = 128, 32, 2048
    else:                                        # v6e and default
        lstm_nb, sf_nb, lin_rows = 256, 64, 2048
    bf16_gates = is_v6 or small_vmem             # bf16 EUP only on v6e/v7x
    margin = (8 << 20) if small_vmem else (16 << 20)
    return dict(vmem=vmem, margin=margin, two_cores=two_cores,
                lstm_nb=lstm_nb, sf_nb=sf_nb, lin_rows=lin_rows,
                bf16_gates=bf16_gates)


def _vmem_limit(need_bytes):
    """Scoped-VMEM limit derived from the actual block sizes, clamped to chip capacity."""
    hw = _hw()
    ceil_ = hw["vmem"] - hw["margin"]
    return int(min(ceil_, max(32 << 20, 2 * need_bytes + (16 << 20))))


def _pick_chunk(n, target):
    """Largest c <= target dividing n with c % 8 == 0 (else n itself)."""
    if n <= target:
        return n
    for c in range(min(n, target), 7, -1):
        if n % c == 0 and c % 8 == 0:
            return c
    return n


def _grid_chunk(n, target, need_fn=None):
    """Pick a batch chunk; keep grid >= 2 on dual-TC chips; shrink to fit VMEM."""
    hw = _hw()
    if hw["two_cores"] and n >= 16:
        target = min(target, n // 2)
    nb = _pick_chunk(n, target)
    if need_fn is not None:
        budget = int(0.9 * (hw["vmem"] - hw["margin"]))
        while nb > 8 and need_fn(nb) > budget:
            cand = _pick_chunk(n, nb // 2)
            if cand >= nb:
                break
            nb = cand
    return nb


# --------------------------- generic linear kernel ----------------------------
def _linear_kernel(x_ref, w_ref, b_ref, o_ref):
    o_ref[...] = (jnp.dot(x_ref[...].astype(jnp.bfloat16), w_ref[...],
                          preferred_element_type=jnp.float32)
                  + b_ref[...]).astype(o_ref.dtype)


def linear(x2, w_bf16, b, *, out_dtype=jnp.float32):
    """x2: (M, K); w_bf16: (K, Nw) bf16; b: (Nw,) -> (M, Nw)."""
    M, K = x2.shape
    Nw = w_bf16.shape[1]
    tm = _grid_chunk(M, _hw()["lin_rows"])
    need = 2 * (tm * K * x2.dtype.itemsize
                + tm * Nw * jnp.dtype(out_dtype).itemsize
                + K * Nw * 2 + Nw * 4)
    return pl.pallas_call(
        _linear_kernel,
        out_shape=jax.ShapeDtypeStruct((M, Nw), out_dtype),
        grid=(M // tm,),
        in_specs=[pl.BlockSpec((tm, K), lambda i: (i, 0)),
                  pl.BlockSpec((K, Nw), lambda i: (0, 0)),   # grid-invariant weight
                  pl.BlockSpec((1, Nw), lambda i: (0, 0))],
        out_specs=pl.BlockSpec((tm, Nw), lambda i: (i, 0)),
        compiler_params=pltpu.CompilerParams(
            dimension_semantics=("parallel",),
            vmem_limit_bytes=_vmem_limit(need)),
    )(x2, w_bf16, b.reshape(1, Nw).astype(jnp.float32))


# ------------------------- fused LSTM layer (per chunk) -----------------------
def _make_lstm_kernel(T, H, bf16_gates, unroll):
    H4 = 4 * H

    def kernel(x_ref, wih_ref, b_ref, whh_ref, lens_ref, o_ref, gx_ref):
        Nb = x_ref.shape[1]
        E = x_ref.shape[2]
        # Fused input projection for all T timesteps of this batch chunk:
        # one (T*Nb, E) @ (E, 4H) MXU matmul, kept in VMEM (no gx HBM round-trip).
        x2 = x_ref[...].reshape(T * Nb, E).astype(jnp.bfloat16)
        gx = jnp.dot(x2, wih_ref[...], preferred_element_type=jnp.float32) + b_ref[...]
        gx_ref[...] = gx.reshape(T, Nb, H4).astype(gx_ref.dtype)

        lens = lens_ref[...]                                      # (Nb, 1) int32

        def step(t, carry):
            h, c = carry
            g = gx_ref[t].astype(jnp.float32) + jnp.dot(
                h.astype(jnp.bfloat16), whh_ref[...],
                preferred_element_type=jnp.float32)               # (Nb, 4H) f32
            ga = g.astype(jnp.bfloat16) if bf16_gates else g      # bf16 EUP (v6e/v7x)
            i = jax.nn.sigmoid(ga[:, 0:H]).astype(jnp.float32)
            f = jax.nn.sigmoid(ga[:, H:2 * H]).astype(jnp.float32)
            gg = jnp.tanh(ga[:, 2 * H:3 * H]).astype(jnp.float32)
            o = jax.nn.sigmoid(ga[:, 3 * H:4 * H]).astype(jnp.float32)
            c = f * c + i * gg
            h = o * jnp.tanh(c)
            # pack_padded semantics: outputs past the sequence length are zero.
            o_ref[t] = jnp.where(t < lens, h, 0.0).astype(o_ref.dtype)
            return (h, c)

        z = jnp.zeros((Nb, H), jnp.float32)
        jax.lax.fori_loop(0, T, step, (z, z), unroll=unroll)

    return kernel


def lstm_stack(x_tm, lstm_params, lens_col):
    """Multi-layer LSTM, time-major.  x_tm: (T, N, E) bf16 -> (T, N, H) bf16."""
    hw = _hw()
    T, N, _ = x_tm.shape
    unroll = True if T <= 32 else 4
    for (w_ih, w_hh, bias) in lstm_params:
        E = x_tm.shape[-1]
        H4 = w_ih.shape[1]
        H = H4 // 4

        def need(nb, E=E, H=H, H4=H4):
            return (2 * T * nb * E * 2            # x block (bf16, double-buffered)
                    + 2 * T * nb * H * 2          # output block (bf16, double-buffered)
                    + T * nb * H4 * 2             # gx scratch (bf16, single)
                    + 2 * (E * H4 * 2 + H * H4 * 2 + H4 * 4 + nb * 4))   # weights/lens

        Nb = _grid_chunk(N, hw["lstm_nb"], need)
        x_tm = pl.pallas_call(
            _make_lstm_kernel(T, H, hw["bf16_gates"], unroll),
            out_shape=jax.ShapeDtypeStruct((T, N, H), jnp.bfloat16),
            grid=(N // Nb,),
            in_specs=[pl.BlockSpec((T, Nb, E), lambda n: (0, n, 0)),
                      pl.BlockSpec((E, H4), lambda n: (0, 0)),
                      pl.BlockSpec((1, H4), lambda n: (0, 0)),
                      pl.BlockSpec((H, H4), lambda n: (0, 0)),
                      pl.BlockSpec((Nb, 1), lambda n: (n, 0))],
            out_specs=pl.BlockSpec((T, Nb, H), lambda n: (0, n, 0)),
            scratch_shapes=[pltpu.VMEM((T, Nb, H4), jnp.bfloat16)],
            compiler_params=pltpu.CompilerParams(
                dimension_semantics=("parallel",),       # batch chunks across TCs
                vmem_limit_bytes=_vmem_limit(need(Nb))),
        )(x_tm, w_ih, bias.reshape(1, H4).astype(jnp.float32), w_hh, lens_col)
    return x_tm


# --------------------------- Self-fusion (SF) kernel --------------------------
# TODO(synk): the SF module source was not provided; implemented as a standard
# masked single-head self-attention + FFN block (residual + LayerNorm).
def _layer_norm(x, g, b, eps=1e-5):
    mu = jnp.mean(x, axis=-1, keepdims=True)
    xc = x - mu
    var = jnp.mean(xc * xc, axis=-1, keepdims=True)
    return xc * jax.lax.rsqrt(var + eps) * g + b


def _make_sf_kernel(do_halve):
    def kernel(x_ref, madd_ref, wqkv_ref, bqkv_ref, wo_ref, bo_ref,
               w1_ref, b1_ref, w2_ref, b2_ref, lng_ref, lnb_ref, *rest):
        if do_halve:
            hw_ref, hb_ref, o_ref = rest
        else:
            (o_ref,) = rest

        Nb, T, H = x_ref.shape
        xb = x_ref[...].reshape(Nb * T, H).astype(jnp.bfloat16)
        xf = xb.astype(jnp.float32)
        scale = 1.0 / (float(H) ** 0.5)

        # Fused QKV projection: one (Nb*T, H) @ (H, 3H) MXU matmul.
        qkv = jnp.dot(xb, wqkv_ref[...], preferred_element_type=jnp.float32) + bqkv_ref[...]
        q = qkv[:, 0:H].astype(jnp.bfloat16).reshape(Nb, T, H)
        k = qkv[:, H:2 * H].astype(jnp.bfloat16).reshape(Nb, T, H)
        v = qkv[:, 2 * H:3 * H].astype(jnp.bfloat16).reshape(Nb, T, H)

        scores = jnp.einsum('btd,bsd->bts', q, k,
                            preferred_element_type=jnp.float32) * scale   # (Nb,T,T)
        scores = scores + madd_ref[...][:, None, :]               # mask padded keys
        scores = scores - jnp.max(scores, axis=-1, keepdims=True)
        p = jnp.exp(scores)
        attn = p / jnp.sum(p, axis=-1, keepdims=True)             # exact softmax
        ctx = jnp.einsum('bts,bsd->btd', attn.astype(jnp.bfloat16), v,
                         preferred_element_type=jnp.float32)      # (Nb, T, H)

        att = (jnp.dot(ctx.reshape(Nb * T, H).astype(jnp.bfloat16), wo_ref[...],
                       preferred_element_type=jnp.float32) + bo_ref[...])

        h1 = _layer_norm(xf + att, lng_ref[0:1, :], lnb_ref[0:1, :])
        ff = jnp.maximum(jnp.dot(h1.astype(jnp.bfloat16), w1_ref[...],
                                 preferred_element_type=jnp.float32) + b1_ref[...], 0.0)
        ffo = jnp.dot(ff.astype(jnp.bfloat16), w2_ref[...],
                      preferred_element_type=jnp.float32) + b2_ref[...]
        h2 = _layer_norm(h1 + ffo, lng_ref[1:2, :], lnb_ref[1:2, :])

        if do_halve:          # fused halve_dimension on the last fusion layer
            h2 = jnp.dot(h2.astype(jnp.bfloat16), hw_ref[...],
                         preferred_element_type=jnp.float32) + hb_ref[...]

        o_ref[...] = h2.reshape(Nb, T, -1).astype(o_ref.dtype)

    return kernel


def sf_block(x, mask_add, sf_params, halve=None, out_dtype=jnp.bfloat16):
    """x: (N, T, H); mask_add: (N, T) f32 additive key mask; halve: optional (w, b)."""
    hw = _hw()
    N, T, H = x.shape
    wqkv, bqkv, wo, bo, w1, b1, w2, b2, lng, lnb = sf_params
    F = w1.shape[1]
    do_halve = halve is not None
    Hout = halve[0].shape[1] if do_halve else H
    osz = jnp.dtype(out_dtype).itemsize

    def need(nb):
        wbytes = (H * 3 * H * 2 + 3 * H * 4 + H * H * 2 + H * 4
                  + H * F * 2 + F * 4 + F * H * 2 + H * 4 + 4 * H * 4)
        if do_halve:
            wbytes += H * Hout * 2 + Hout * 4
        blk = nb * T * (H * x.dtype.itemsize + Hout * osz + 4)
        # headroom for f32 in-kernel intermediates (qkv, attention, ffn)
        tmp = nb * T * (3 * H + F + 2 * H) * 4 + nb * T * T * 4
        return 2 * blk + 2 * wbytes + tmp

    Nb = _grid_chunk(N, hw["sf_nb"], need)

    in_specs = [
        pl.BlockSpec((Nb, T, H), lambda n: (n, 0, 0)),
        pl.BlockSpec((Nb, T), lambda n: (n, 0)),
        pl.BlockSpec((H, 3 * H), lambda n: (0, 0)),
        pl.BlockSpec((1, 3 * H), lambda n: (0, 0)),
        pl.BlockSpec((H, H), lambda n: (0, 0)),
        pl.BlockSpec((1, H), lambda n: (0, 0)),
        pl.BlockSpec((H, F), lambda n: (0, 0)),
        pl.BlockSpec((1, F), lambda n: (0, 0)),
        pl.BlockSpec((F, H), lambda n: (0, 0)),
        pl.BlockSpec((1, H), lambda n: (0, 0)),
        pl.BlockSpec((2, H), lambda n: (0, 0)),
        pl.BlockSpec((2, H), lambda n: (0, 0)),
    ]
    args = [x, mask_add, wqkv, bqkv.reshape(1, 3 * H), wo, bo.reshape(1, H),
            w1, b1.reshape(1, F), w2, b2.reshape(1, H), lng, lnb]
    if do_halve:
        hwt, hb = halve
        in_specs += [pl.BlockSpec((H, Hout), lambda n: (0, 0)),
                     pl.BlockSpec((1, Hout), lambda n: (0, 0))]
        args += [hwt, hb.reshape(1, Hout)]

    return pl.pallas_call(
        _make_sf_kernel(do_halve),
        out_shape=jax.ShapeDtypeStruct((N, T, Hout), out_dtype),
        grid=(N // Nb,),
        in_specs=in_specs,
        out_specs=pl.BlockSpec((Nb, T, Hout), lambda n: (n, 0, 0)),
        compiler_params=pltpu.CompilerParams(
            dimension_semantics=("parallel",),
            vmem_limit_bytes=_vmem_limit(need(Nb))),
    )(*args)


# ------------------------------ parameter setup -------------------------------
def init_params(key, vocab_size, E, H, num_layers, fusion_layer, disentangle):
    keys = iter(jax.random.split(key, 64))
    params = {}
    params["embed"] = (0.1 * jax.random.normal(next(keys), (vocab_size, E),
                                               jnp.float32)).astype(jnp.bfloat16)

    lstm = []
    in_size = E
    for _ in range(num_layers):
        w_ih = (0.1 * jax.random.normal(next(keys), (in_size, 4 * H), jnp.float32)
                ).astype(jnp.bfloat16)                            # (E, 4H)
        w_hh = (0.1 * jax.random.normal(next(keys), (H, 4 * H), jnp.float32)
                ).astype(jnp.bfloat16)                            # (H, 4H)
        bias = jnp.zeros((4 * H,), jnp.float32)                   # b_ih + b_hh combined
        lstm.append((w_ih, w_hh, bias))
        in_size = H
    params["lstm"] = lstm

    F = 4 * H
    sf = []
    for _ in range(fusion_layer):
        wqkv = (0.1 * jax.random.normal(next(keys), (H, 3 * H), jnp.float32)).astype(jnp.bfloat16)
        bqkv = jnp.zeros((3 * H,), jnp.float32)
        wo = (0.1 * jax.random.normal(next(keys), (H, H), jnp.float32)).astype(jnp.bfloat16)
        bo = jnp.zeros((H,), jnp.float32)
        w1 = (0.1 * jax.random.normal(next(keys), (H, F), jnp.float32)).astype(jnp.bfloat16)
        b1 = jnp.zeros((F,), jnp.float32)
        w2 = (0.1 * jax.random.normal(next(keys), (F, H), jnp.float32)).astype(jnp.bfloat16)
        b2 = jnp.zeros((H,), jnp.float32)
        lng = jnp.ones((2, H), jnp.float32)
        lnb = jnp.zeros((2, H), jnp.float32)
        sf.append((wqkv, bqkv, wo, bo, w1, b1, w2, b2, lng, lnb))
    params["sf"] = sf

    if disentangle:
        bound = (6.0 / H) ** 0.5                                  # kaiming_uniform-ish
        params["halve_w"] = jax.random.uniform(next(keys), (H, H // 2), jnp.float32,
                                               minval=-bound, maxval=bound
                                               ).astype(jnp.bfloat16)
        params["halve_b"] = jnp.zeros((H // 2,), jnp.float32)
    return params


# --------------------------- HistoryEncoder forward ---------------------------
def history_encoder_forward(params, cap, cap_length, hist, hist_length, disentangle=True):
    B, R, T = hist.shape
    hist_length = hist_length.reshape(B, R, 1)
    cap_length = cap_length.reshape(B, 1, 1)
    hist_trunc = hist[:, :-1, :]
    hl_trunc = hist_length[:, :-1, :]
    cap_r = cap.reshape(B, 1, T)
    hist_full = jnp.concatenate([cap_r, hist_trunc], axis=1)          # (B, R, T)
    hist_len_full = jnp.concatenate([cap_length, hl_trunc], axis=1)   # (B, R, 1)

    N = B * R
    tokens = hist_full.reshape(N, T)
    lens = hist_len_full.reshape(N).astype(jnp.int32)

    # Word-embedding gather, emitted time-major directly (only the small int32
    # token matrix is transposed — no (N,T,E) activation transpose in HBM).
    feats_tm = jnp.take(params["embed"], tokens.T, axis=0)            # (T, N, E) bf16

    # DynamicRNN: multi-layer LSTM with pack_padded semantics (padded steps -> 0).
    # TODO(synk): inter-layer dropout (opt.dropout) skipped — eval-mode semantics.
    feats_tm = lstm_stack(feats_tm, params["lstm"], lens.reshape(N, 1))   # (T,N,H) bf16

    # make_mask(feature): padded positions of the packed LSTM output are exactly
    # zero, so the mask is derived directly (and exactly) from the lengths.
    valid = jnp.arange(T, dtype=jnp.int32)[None, :] < lens[:, None]       # (N, T)
    feat_mask = (~valid)[:, None, None, :]                                # (N,1,1,T)
    mask_add = jnp.where(valid, 0.0, -1e9).astype(jnp.float32)            # (N, T)

    # Single remaining activation transpose (bf16) to batch-major for fusion.
    feats = jnp.transpose(feats_tm, (1, 0, 2))                            # (N, T, H)

    n_sf = len(params["sf"])
    if n_sf > 0:
        for li, sf_params in enumerate(params["sf"]):
            last = li == n_sf - 1
            fuse_halve = disentangle and last
            feats = sf_block(
                feats, mask_add, sf_params,
                halve=(params["halve_w"], params["halve_b"]) if fuse_halve else None,
                out_dtype=jnp.float32 if last else jnp.bfloat16)
    else:
        feats = feats.astype(jnp.float32)
        if disentangle:
            # Standalone halve_dimension (row-tiled) when there is no fusion layer.
            N_, T_, H_ = feats.shape
            feats = linear(feats.reshape(N_ * T_, H_), params["halve_w"],
                           params["halve_b"]).reshape(N_, T_, -1)

    return feats, feat_mask, hist_len_full


if __name__ == "__main__":
    key = jax.random.PRNGKey(0)
    B, R, T = 2, 4, 8                  # batch, num_rounds, max_sequence_length
    vocab, E, H = 50, 32, 32           # vocab, word_embedding_size, lstm_hidden_size
    num_layers, fusion_layer = 2, 2

    k1, k2, k3, k4, kp = jax.random.split(key, 5)
    cap = jax.random.randint(k1, (B, T), 1, vocab, dtype=jnp.int32)
    hist = jax.random.randint(k2, (B, R, T), 1, vocab, dtype=jnp.int32)
    cap_length = jax.random.randint(k3, (B,), 2, T + 1, dtype=jnp.int32)
    hist_length = jax.random.randint(k4, (B, R), 2, T + 1, dtype=jnp.int32)

    params = init_params(kp, vocab, E, H, num_layers, fusion_layer, disentangle=True)

    feats, mask, lens = history_encoder_forward(
        params, cap, cap_length, hist, hist_length, disentangle=True)
    jax.block_until_ready(feats)
    assert feats.shape == (B * R, T, H // 2)
    assert mask.shape == (B * R, 1, 1, T)
    assert lens.shape == (B, R, 1)
    assert bool(jnp.all(jnp.isfinite(feats)))
    print("KERNEL_OK")
</pallas_src>

<mosaic_0001>
module attributes {stable_mosaic.version = 11 : i64} {
  func.func @kernel(%arg0: i32, %arg1: memref<8x8x32xbf16, #tpu.memory_space<vmem>>, %arg2: memref<32x128xbf16, #tpu.memory_space<vmem>>, %arg3: memref<1x128xf32, #tpu.memory_space<vmem>>, %arg4: memref<32x128xbf16, #tpu.memory_space<vmem>>, %arg5: memref<8x1xi32, #tpu.memory_space<vmem>>, %arg6: memref<8x8x32xbf16, #tpu.memory_space<vmem>>, %arg7: memref<8x8x128xbf16, #tpu.memory_space<vmem>>) attributes {dimension_semantics = [#tpu.dimension_semantics<parallel>], iteration_bounds = array<i64: 1>, scalar_prefetch = 0 : i64, scratch_operands = 1 : i64, tpu.core_type = #tpu.core_type<tc>, window_params = [{transform_indices = @transform_0, window_bounds = array<i64: 8, 8, 32>}, {pipeline_mode = #tpu.pipeline_mode<synchronous>, transform_indices = @transform_1, window_bounds = array<i64: 32, 128>}, {pipeline_mode = #tpu.pipeline_mode<synchronous>, transform_indices = @transform_2, window_bounds = array<i64: 1, 128>}, {pipeline_mode = #tpu.pipeline_mode<synchronous>, transform_indices = @transform_3, window_bounds = array<i64: 32, 128>}, {transform_indices = @transform_4, window_bounds = array<i64: 8, 1>}, {transform_indices = @transform_5, window_bounds = array<i64: 8, 8, 32>}]} {
    %c0 = arith.constant 0 : index
    %c0_0 = arith.constant 0 : index
    %c0_1 = arith.constant 0 : index
    %0 = vector.load %arg1[%c0, %c0_0, %c0_1] : memref<8x8x32xbf16, #tpu.memory_space<vmem>>, vector<8x8x32xbf16>
    %1 = vector.shape_cast %0 : vector<8x8x32xbf16> to vector<64x32xbf16>
    %c0_2 = arith.constant 0 : index
    %c0_3 = arith.constant 0 : index
    %2 = vector.load %arg2[%c0_2, %c0_3] : memref<32x128xbf16, #tpu.memory_space<vmem>>, vector<32x128xbf16>
    %cst = arith.constant dense<0.000000e+00> : vector<64x128xf32>
    %3 = tpu.matmul %1, %2, %cst {dimension_numbers = #tpu.dot_dimension_numbers<[1], [0], [0], [1], [0, 0, 1, 1], [], []>} : vector<64x32xbf16>, vector<32x128xbf16>, vector<64x128xf32> -> vector<64x128xf32>
    %c0_4 = arith.constant 0 : index
    %c0_5 = arith.constant 0 : index
    %4 = vector.load %arg3[%c0_4, %c0_5] : memref<1x128xf32, #tpu.memory_space<vmem>>, vector<1x128xf32>
    %5 = vector.broadcast %4 : vector<1x128xf32> to vector<64x128xf32>
    %6 = arith.addf %3, %5 : vector<64x128xf32>
    %7 = vector.shape_cast %6 : vector<64x128xf32> to vector<8x8x128xf32>
    %8 = arith.truncf %7 : vector<8x8x128xf32> to vector<8x8x128xbf16>
    %c0_6 = arith.constant 0 : index
    %c0_7 = arith.constant 0 : index
    %c0_8 = arith.constant 0 : index
    %9 = vector.load %arg7[%c0_6, %c0_7, %c0_8] : memref<8x8x128xbf16, #tpu.memory_space<vmem>>, vector<8x8x128xbf16>
    tpu.vector_store %arg7[%c0_6, %c0_7, %c0_8], %8 {strides = array<i32>} : memref<8x8x128xbf16, #tpu.memory_space<vmem>>, vector<8x8x128xbf16>,
    %c0_9 = arith.constant 0 : index
    %c0_10 = arith.constant 0 : index
    %10 = vector.load %arg5[%c0_9, %c0_10] : memref<8x1xi32, #tpu.memory_space<vmem>>, vector<8x1xi32>
    %cst_11 = arith.constant 0.000000e+00 : f32
    %11 = vector.broadcast %cst_11 : f32 to vector<8x32xf32>
    %c0_i32 = arith.constant 0 : i32
    %12 = arith.index_cast %c0_i32 : i32 to index
    %c0_12 = arith.constant 0 : index
    %c0_13 = arith.constant 0 : index
    %13 = vector.load %arg7[%12, %c0_12, %c0_13] : memref<8x8x128xbf16, #tpu.memory_space<vmem>>, vector<1x8x128xbf16>
    %14 = vector.shape_cast %13 : vector<1x8x128xbf16> to vector<8x128xbf16>
    %15 = arith.extf %14 : vector<8x128xbf16> to vector<8x128xf32>
    %16 = arith.truncf %11 : vector<8x32xf32> to vector<8x32xbf16>
    %c0_14 = arith.constant 0 : index
    %c0_15 = arith.constant 0 : index
    %17 = vector.load %arg4[%c0_14, %c0_15] : memref<32x128xbf16, #tpu.memory_space<vmem>>, vector<32x128xbf16>
    %cst_16 = arith.constant dense<0.000000e+00> : vector<8x128xf32>
    %18 = tpu.matmul %16, %17, %cst_16 {dimension_numbers = #tpu.dot_dimension_numbers<[1], [0], [0], [1], [0, 0, 1, 1], [], []>} : vector<8x32xbf16>, vector<32x128xbf16>, vector<8x128xf32> -> vector<8x128xf32>
    %19 = arith.addf %15, %18 : vector<8x128xf32>
    %20 = vector.extract_strided_slice %19 {offsets = [0, 0], sizes = [8, 32], strides = [1, 1]} : vector<8x128xf32> to vector<8x32xf32>
    %21 = arith.negf %20 : vector<8x32xf32>
    %22 = math.exp %21 : vector<8x32xf32>
    %cst_17 = arith.constant 1.000000e+00 : f32
    %23 = vector.broadcast %cst_17 : f32 to vector<8x32xf32>
    %24 = arith.addf %23, %22 : vector<8x32xf32>
    %25 = arith.divf %23, %24 : vector<8x32xf32>
    %26 = vector.extract_strided_slice %19 {offsets = [0, 32], sizes = [8, 32], strides = [1, 1]} : vector<8x128xf32> to vector<8x32xf32>
    %27 = arith.negf %26 : vector<8x32xf32>
    %28 = math.exp %27 : vector<8x32xf32>
    %cst_18 = arith.constant 1.000000e+00 : f32
    %29 = vector.broadcast %cst_18 : f32 to vector<8x32xf32>
    %30 = arith.addf %29, %28 : vector<8x32xf32>
    %31 = arith.divf %29, %30 : vector<8x32xf32>
    %32 = vector.extract_strided_slice %19 {offsets = [0, 64], sizes = [8, 32], strides = [1, 1]} : vector<8x128xf32> to vector<8x32xf32>
    %33 = math.tanh %32 : vector<8x32xf32>
    %34 = vector.extract_strided_slice %19 {offsets = [0, 96], sizes = [8, 32], strides = [1, 1]} : vector<8x128xf32> to vector<8x32xf32>
    %35 = arith.negf %34 : vector<8x32xf32>
    %36 = math.exp %35 : vector<8x32xf32>
    %cst_19 = arith.constant 1.000000e+00 : f32
    %37 = vector.broadcast %cst_19 : f32 to vector<8x32xf32>
    %38 = arith.addf %37, %36 : vector<8x32xf32>
    %39 = arith.divf %37, %38 : vector<8x32xf32>
    %40 = arith.mulf %31, %11 : vector<8x32xf32>
    %41 = arith.mulf %25, %33 : vector<8x32xf32>
    %42 = arith.addf %40, %41 : vector<8x32xf32>
    %43 = math.tanh %42 : vector<8x32xf32>
    %44 = arith.mulf %39, %43 : vector<8x32xf32>
    %45 = vector.broadcast %c0_i32 : i32 to vector<8x1xi32>
    %46 = arith.cmpi slt, %45, %10 : vector<8x1xi32>
    %cst_20 = arith.constant 0.000000e+00 : f32
    %47 = vector.shape_cast %46 : vector<8x1xi1> to vector<8x1xi1>
    %48 = vector.broadcast %47 : vector<8x1xi1> to vector<8x32xi1>
    %49 = vector.broadcast %cst_20 : f32 to vector<8x32xf32>
    %50 = arith.select %48, %44, %49 : vector<8x32xi1>, vector<8x32xf32>
    %51 = arith.truncf %50 : vector<8x32xf32> to vector<8x32xbf16>
    %52 = arith.index_cast %c0_i32 : i32 to index
    %c0_21 = arith.constant 0 : index
    %c0_22 = arith.constant 0 : index
    %53 = vector.load %arg6[%52, %c0_21, %c0_22] : memref<8x8x32xbf16, #tpu.memory_space<vmem>>, vector<1x8x32xbf16>
    %54 = vector.shape_cast %53 : vector<1x8x32xbf16> to vector<8x32xbf16>
    %55 = vector.shape_cast %51 : vector<8x32xbf16> to vector<1x8x32xbf16>
    tpu.vector_store %arg6[%52, %c0_21, %c0_22], %55 {strides = array<i32>} : memref<8x8x32xbf16, #tpu.memory_space<vmem>>, vector<1x8x32xbf16>,
    %c1_i32 = arith.constant 1 : i32
    %56 = arith.index_cast %c1_i32 : i32 to index
    %c0_23 = arith.constant 0 : index
    %c0_24 = arith.constant 0 : index
    %57 = vector.load %arg7[%56, %c0_23, %c0_24] : memref<8x8x128xbf16, #tpu.memory_space<vmem>>, vector<1x8x128xbf16>
    %58 = vector.shape_cast %57 : vector<1x8x128xbf16> to vector<8x128xbf16>
    %59 = arith.extf %58 : vector<8x128xbf16> to vector<8x128xf32>
    %60 = arith.truncf %44 : vector<8x32xf32> to vector<8x32xbf16>
    %c0_25 = arith.constant 0 : index
    %c0_26 = arith.constant 0 : index
    %61 = vector.load %arg4[%c0_25, %c0_26] : memref<32x128xbf16, #tpu.memory_space<vmem>>, vector<32x128xbf16>
    %cst_27 = arith.constant dense<0.000000e+00> : vector<8x128xf32>
    %62 = tpu.matmul %60, %61, %cst_27 {dimension_numbers = #tpu.dot_dimension_numbers<[1], [0], [0], [1], [0, 0, 1, 1], [], []>} : vector<8x32xbf16>, vector<32x128xbf16>, vector<8x128xf32> -> vector<8x128xf32>
    %63 = arith.addf %59, %62 : vector<8x128xf32>
    %64 = vector.extract_strided_slice %63 {offsets = [0, 0], sizes = [8, 32], strides = [1, 1]} : vector<8x128xf32> to vector<8x32xf32>
    %65 = arith.negf %64 : vector<8x32xf32>
    %66 = math.exp %65 : vector<8x32xf32>
    %cst_28 = arith.constant 1.000000e+00 : f32
    %67 = vector.broadcast %cst_28 : f32 to vector<8x32xf32>
    %68 = arith.addf %67, %66 : vector<8x32xf32>
    %69 = arith.divf %67, %68 : vector<8x32xf32>
    %70 = vector.extract_strided_slice %63 {offsets = [0, 32], sizes = [8, 32], strides = [1, 1]} : vector<8x128xf32> to vector<8x32xf32>
    %71 = arith.negf %70 : vector<8x32xf32>
    %72 = math.exp %71 : vector<8x32xf32>
    %cst_29 = arith.constant 1.000000e+00 : f32
    %73 = vector.broadcast %cst_29 : f32 to vector<8x32xf32>
    %74 = arith.addf %73, %72 : vector<8x32xf32>
    %75 = arith.divf %73, %74 : vector<8x32xf32>
    %76 = vector.extract_strided_slice %63 {offsets = [0, 64], sizes = [8, 32], strides = [1, 1]} : vector<8x128xf32> to vector<8x32xf32>
    %77 = math.tanh %76 : vector<8x32xf32>
    %78 = vector.extract_strided_slice %63 {offsets = [0, 96], sizes = [8, 32], strides = [1, 1]} : vector<8x128xf32> to vector<8x32xf32>
    %79 = arith.negf %78 : vector<8x32xf32>
    %80 = math.exp %79 : vector<8x32xf32>
    %cst_30 = arith.constant 1.000000e+00 : f32
    %81 = vector.broadcast %cst_30 : f32 to vector<8x32xf32>
    %82 = arith.addf %81, %80 : vector<8x32xf32>
    %83 = arith.divf %81, %82 : vector<8x32xf32>
    %84 = arith.mulf %75, %42 : vector<8x32xf32>
    %85 = arith.mulf %69, %77 : vector<8x32xf32>
    %86 = arith.addf %84, %85 : vector<8x32xf32>
    %87 = math.tanh %86 : vector<8x32xf32>
    %88 = arith.mulf %83, %87 : vector<8x32xf32>
    %89 = vector.broadcast %c1_i32 : i32 to vector<8x1xi32>
    %90 = arith.cmpi slt, %89, %10 : vector<8x1xi32>
    %cst_31 = arith.constant 0.000000e+00 : f32
    %91 = vector.shape_cast %90 : vector<8x1xi1> to vector<8x1xi1>
    %92 = vector.broadcast %91 : vector<8x1xi1> to vector<8x32xi1>
    %93 = vector.broadcast %cst_31 : f32 to vector<8x32xf32>
    %94 = arith.select %92, %88, %93 : vector<8x32xi1>, vector<8x32xf32>
    %95 = arith.truncf %94 : vector<8x32xf32> to vector<8x32xbf16>
    %96 = arith.index_cast %c1_i32 : i32 to index
    %c0_32 = arith.constant 0 : index
    %c0_33 = arith.constant 0 : index
    %97 = vector.load %arg6[%96, %c0_32, %c0_33] : memref<8x8x32xbf16, #tpu.memory_space<vmem>>, vector<1x8x32xbf16>
    %98 = vector.shape_cast %97 : vector<1x8x32xbf16> to vector<8x32xbf16>
    %99 = vector.shape_cast %95 : vector<8x32xbf16> to vector<1x8x32xbf16>
    tpu.vector_store %arg6[%96, %c0_32, %c0_33], %99 {strides = array<i32>} : memref<8x8x32xbf16, #tpu.memory_space<vmem>>, vector<1x8x32xbf16>,
    %c2_i32 = arith.constant 2 : i32
    %100 = arith.index_cast %c2_i32 : i32 to index
    %c0_34 = arith.constant 0 : index
    %c0_35 = arith.constant 0 : index
    %101 = vector.load %arg7[%100, %c0_34, %c0_35] : memref<8x8x128xbf16, #tpu.memory_space<vmem>>, vector<1x8x128xbf16>
    %102 = vector.shape_cast %101 : vector<1x8x128xbf16> to vector<8x128xbf16>
    %103 = arith.extf %102 : vector<8x128xbf16> to vector<8x128xf32>
    %104 = arith.truncf %88 : vector<8x32xf32> to vector<8x32xbf16>
    %c0_36 = arith.constant 0 : index
    %c0_37 = arith.constant 0 : index
    %105 = vector.load %arg4[%c0_36, %c0_37] : memref<32x128xbf16, #tpu.memory_space<vmem>>, vector<32x128xbf16>
    %cst_38 = arith.constant dense<0.000000e+00> : vector<8x128xf32>
    %106 = tpu.matmul %104, %105, %cst_38 {dimension_numbers = #tpu.dot_dimension_numbers<[1], [0], [0], [1], [0, 0, 1, 1], [], []>} : vector<8x32xbf16>, vector<32x128xbf16>, vector<8x128xf32> -> vector<8x128xf32>
    %107 = arith.addf %103, %106 : vector<8x128xf32>
    %108 = vector.extract_strided_slice %107 {offsets = [0, 0], sizes = [8, 32], strides = [1, 1]} : vector<8x128xf32> to vector<8x32xf32>
    %109 = arith.negf %108 : vector<8x32xf32>
    %110 = math.exp %109 : vector<8x32xf32>
    %cst_39 = arith.constant 1.000000e+00 : f32
    %111 = vector.broadcast %cst_39 : f32 to vector<8x32xf32>
    %112 = arith.addf %111, %110 : vector<8x32xf32>
    %113 = arith.divf %111, %112 : vector<8x32xf32>
    %114 = vector.extract_strided_slice %107 {offsets = [0, 32], sizes = [8, 32], strides = [1, 1]} : vector<8x128xf32> to vector<8x32xf32>
    %115 = arith.negf %114 : vector<8x32xf32>
    %116 = math.exp %115 : vector<8x32xf32>
    %cst_40 = arith.constant 1.000000e+00 : f32
    %117 = vector.broadcast %cst_40 : f32 to vector<8x32xf32>
    %118 = arith.addf %117, %116 : vector<8x32xf32>
    %119 = arith.divf %117, %118 : vector<8x32xf32>
    %120 = vector.extract_strided_slice %107 {offsets = [0, 64], sizes = [8, 32], strides = [1, 1]} : vector<8x128xf32> to vector<8x32xf32>
    %121 = math.tanh %120 : vector<8x32xf32>
    %122 = vector.extract_strided_slice %107 {offsets = [0, 96], sizes = [8, 32], strides = [1, 1]} : vector<8x128xf32> to vector<8x32xf32>
    %123 = arith.negf %122 : vector<8x32xf32>
    %124 = math.exp %123 : vector<8x32xf32>
    %cst_41 = arith.constant 1.000000e+00 : f32
    %125 = vector.broadcast %cst_41 : f32 to vector<8x32xf32>
    %126 = arith.addf %125, %124 : vector<8x32xf32>
    %127 = arith.divf %125, %126 : vector<8x32xf32>
    %128 = arith.mulf %119, %86 : vector<8x32xf32>
    %129 = arith.mulf %113, %121 : vector<8x32xf32>
    %130 = arith.addf %128, %129 : vector<8x32xf32>
    %131 = math.tanh %130 : vector<8x32xf32>
    %132 = arith.mulf %127, %131 : vector<8x32xf32>
    %133 = vector.broadcast %c2_i32 : i32 to vector<8x1xi32>
    %134 = arith.cmpi slt, %133, %10 : vector<8x1xi32>
    %cst_42 = arith.constant 0.000000e+00 : f32
    %135 = vector.shape_cast %134 : vector<8x1xi1> to vector<8x1xi1>
    %136 = vector.broadcast %135 : vector<8x1xi1> to vector<8x32xi1>
    %137 = vector.broadcast %cst_42 : f32 to vector<8x32xf32>
    %138 = arith.select %136, %132, %137 : vector<8x32xi1>, vector<8x32xf32>
    %139 = arith.truncf %138 : vector<8x32xf32> to vector<8x32xbf16>
    %140 = arith.index_cast %c2_i32 : i32 to index
    %c0_43 = arith.constant 0 : index
    %c0_44 = arith.constant 0 : index
    %141 = vector.load %arg6[%140, %c0_43, %c0_44] : memref<8x8x32xbf16, #tpu.memory_space<vmem>>, vector<1x8x32xbf16>
    %142 = vector.shape_cast %141 : vector<1x8x32xbf16> to vector<8x32xbf16>
    %143 = vector.shape_cast %139 : vector<8x32xbf16> to vector<1x8x32xbf16>
    tpu.vector_store %arg6[%140, %c0_43, %c0_44], %143 {strides = array<i32>} : memref<8x8x32xbf16, #tpu.memory_space<vmem>>, vector<1x8x32xbf16>,
    %c3_i32 = arith.constant 3 : i32
    %144 = arith.index_cast %c3_i32 : i32 to index
    %c0_45 = arith.constant 0 : index
    %c0_46 = arith.constant 0 : index
    %145 = vector.load %arg7[%144, %c0_45, %c0_46] : memref<8x8x128xbf16, #tpu.memory_space<vmem>>, vector<1x8x128xbf16>
    %146 = vector.shape_cast %145 : vector<1x8x128xbf16> to vector<8x128xbf16>
    %147 = arith.extf %146 : vector<8x128xbf16> to vector<8x128xf32>
    %148 = arith.truncf %132 : vector<8x32xf32> to vector<8x32xbf16>
    %c0_47 = arith.constant 0 : index
    %c0_48 = arith.constant 0 : index
    %149 = vector.load %arg4[%c0_47, %c0_48] : memref<32x128xbf16, #tpu.memory_space<vmem>>, vector<32x128xbf16>
    %cst_49 = arith.constant dense<0.000000e+00> : vector<8x128xf32>
    %150 = tpu.matmul %148, %149, %cst_49 {dimension_numbers = #tpu.dot_dimension_numbers<[1], [0], [0], [1], [0, 0, 1, 1], [], []>} : vector<8x32xbf16>, vector<32x128xbf16>, vector<8x128xf32> -> vector<8x128xf32>
    %151 = arith.addf %147, %150 : vector<8x128xf32>
    %152 = vector.extract_strided_slice %151 {offsets = [0, 0], sizes = [8, 32], strides = [1, 1]} : vector<8x128xf32> to vector<8x32xf32>
    %153 = arith.negf %152 : vector<8x32xf32>
    %154 = math.exp %153 : vector<8x32xf32>
    %cst_50 = arith.constant 1.000000e+00 : f32
    %155 = vector.broadcast %cst_50 : f32 to vector<8x32xf32>
    %156 = arith.addf %155, %154 : vector<8x32xf32>
    %157 = arith.divf %155, %156 : vector<8x32xf32>
    %158 = vector.extract_strided_slice %151 {offsets = [0, 32], sizes = [8, 32], strides = [1, 1]} : vector<8x128xf32> to vector<8x32xf32>
    %159 = arith.negf %158 : vector<8x32xf32>
    %160 = math.exp %159 : vector<8x32xf32>
    %cst_51 = arith.constant 1.000000e+00 : f32
    %161 = vector.broadcast %cst_51 : f32 to vector<8x32xf32>
    %162 = arith.addf %161, %160 : vector<8x32xf32>
    %163 = arith.divf %161, %162 : vector<8x32xf32>
    %164 = vector.extract_strided_slice %151 {offsets = [0, 64], sizes = [8, 32], strides = [1, 1]} : vector<8x128xf32> to vector<8x32xf32>
    %165 = math.tanh %164 : vector<8x32xf32>
    %166 = vector.extract_strided_slice %151 {offsets = [0, 96], sizes = [8, 32], strides = [1, 1]} : vector<8x128xf32> to vector<8x32xf32>
    %167 = arith.negf %166 : vector<8x32xf32>
    %168 = math.exp %167 : vector<8x32xf32>
    %cst_52 = arith.constant 1.000000e+00 : f32
    %169 = vector.broadcast %cst_52 : f32 to vector<8x32xf32>
    %170 = arith.addf %169, %168 : vector<8x32xf32>
    %171 = arith.divf %169, %170 : vector<8x32xf32>
    %172 = arith.mulf %163, %130 : vector<8x32xf32>
    %173 = arith.mulf %157, %165 : vector<8x32xf32>
    %174 = arith.addf %172, %173 : vector<8x32xf32>
    %175 = math.tanh %174 : vector<8x32xf32>
    %176 = arith.mulf %171, %175 : vector<8x32xf32>
    %177 = vector.broadcast %c3_i32 : i32 to vector<8x1xi32>
    %178 = arith.cmpi slt, %177, %10 : vector<8x1xi32>
    %cst_53 = arith.constant 0.000000e+00 : f32
    %179 = vector.shape_cast %178 : vector<8x1xi1> to vector<8x1xi1>
    %180 = vector.broadcast %179 : vector<8x1xi1> to vector<8x32xi1>
    %181 = vector.broadcast %cst_53 : f32 to vector<8x32xf32>
    %182 = arith.select %180, %176, %181 : vector<8x32xi1>, vector<8x32xf32>
    %183 = arith.truncf %182 : vector<8x32xf32> to vector<8x32xbf16>
    %184 = arith.index_cast %c3_i32 : i32 to index
    %c0_54 = arith.constant 0 : index
    %c0_55 = arith.constant 0 : index
    %185 = vector.load %arg6[%184, %c0_54, %c0_55] : memref<8x8x32xbf16, #tpu.memory_space<vmem>>, vector<1x8x32xbf16>
    %186 = vector.shape_cast %185 : vector<1x8x32xbf16> to vector<8x32xbf16>
    %187 = vector.shape_cast %183 : vector<8x32xbf16> to vector<1x8x32xbf16>
    tpu.vector_store %arg6[%184, %c0_54, %c0_55], %187 {strides = array<i32>} : memref<8x8x32xbf16, #tpu.memory_space<vmem>>, vector<1x8x32xbf16>,
    %c4_i32 = arith.constant 4 : i32
    %188 = arith.index_cast %c4_i32 : i32 to index
    %c0_56 = arith.constant 0 : index
    %c0_57 = arith.constant 0 : index
    %189 = vector.load %arg7[%188, %c0_56, %c0_57] : memref<8x8x128xbf16, #tpu.memory_space<vmem>>, vector<1x8x128xbf16>
    %190 = vector.shape_cast %189 : vector<1x8x128xbf16> to vector<8x128xbf16>
    %191 = arith.extf %190 : vector<8x128xbf16> to vector<8x128xf32>
    %192 = arith.truncf %176 : vector<8x32xf32> to vector<8x32xbf16>
    %c0_58 = arith.constant 0 : index
    %c0_59 = arith.constant 0 : index
    %193 = vector.load %arg4[%c0_58, %c0_59] : memref<32x128xbf16, #tpu.memory_space<vmem>>, vector<32x128xbf16>
    %cst_60 = arith.constant dense<0.000000e+00> : vector<8x128xf32>
    %194 = tpu.matmul %192, %193, %cst_60 {dimension_numbers = #tpu.dot_dimension_numbers<[1], [0], [0], [1], [0, 0, 1, 1], [], []>} : vector<8x32xbf16>, vector<32x128xbf16>, vector<8x128xf32> -> vector<8x128xf32>
    %195 = arith.addf %191, %194 : vector<8x128xf32>
    %196 = vector.extract_strided_slice %195 {offsets = [0, 0], sizes = [8, 32], strides = [1, 1]} : vector<8x128xf32> to vector<8x32xf32>
    %197 = arith.negf %196 : vector<8x32xf32>
    %198 = math.exp %197 : vector<8x32xf32>
    %cst_61 = arith.constant 1.000000e+00 : f32
    %199 = vector.broadcast %cst_61 : f32 to vector<8x32xf32>
    %200 = arith.addf %199, %198 : vector<8x32xf32>
    %201 = arith.divf %199, %200 : vector<8x32xf32>
    %202 = vector.extract_strided_slice %195 {offsets = [0, 32], sizes = [8, 32], strides = [1, 1]} : vector<8x128xf32> to vector<8x32xf32>
    %203 = arith.negf %202 : vector<8x32xf32>
    %204 = math.exp %203 : vector<8x32xf32>
    %cst_62 = arith.constant 1.000000e+00 : f32
    %205 = vector.broadcast %cst_62 : f32 to vector<8x32xf32>
    %206 = arith.addf %205, %204 : vector<8x32xf32>
    %207 = arith.divf %205, %206 : vector<8x32xf32>
    %208 = vector.extract_strided_slice %195 {offsets = [0, 64], sizes = [8, 32], strides = [1, 1]} : vector<8x128xf32> to vector<8x32xf32>
    %209 = math.tanh %208 : vector<8x32xf32>
    %210 = vector.extract_strided_slice %195 {offsets = [0, 96], sizes = [8, 32], strides = [1, 1]} : vector<8x128xf32> to vector<8x32xf32>
    %211 = arith.negf %210 : vector<8x32xf32>
    %212 = math.exp %211 : vector<8x32xf32>
    %cst_63 = arith.constant 1.000000e+00 : f32
    %213 = vector.broadcast %cst_63 : f32 to vector<8x32xf32>
    %214 = arith.addf %213, %212 : vector<8x32xf32>
    %215 = arith.divf %213, %214 : vector<8x32xf32>
    %216 = arith.mulf %207, %174 : vector<8x32xf32>
    %217 = arith.mulf %201, %209 : vector<8x32xf32>
    %218 = arith.addf %216, %217 : vector<8x32xf32>
    %219 = math.tanh %218 : vector<8x32xf32>
    %220 = arith.mulf %215, %219 : vector<8x32xf32>
    %221 = vector.broadcast %c4_i32 : i32 to vector<8x1xi32>
    %222 = arith.cmpi slt, %221, %10 : vector<8x1xi32>
    %cst_64 = arith.constant 0.000000e+00 : f32
    %223 = vector.shape_cast %222 : vector<8x1xi1> to vector<8x1xi1>
    %224 = vector.broadcast %223 : vector<8x1xi1> to vector<8x32xi1>
    %225 = vector.broadcast %cst_64 : f32 to vector<8x32xf32>
    %226 = arith.select %224, %220, %225 : vector<8x32xi1>, vector<8x32xf32>
    %227 = arith.truncf %226 : vector<8x32xf32> to vector<8x32xbf16>
    %228 = arith.index_cast %c4_i32 : i32 to index
    %c0_65 = arith.constant 0 : index
    %c0_66 = arith.constant 0 : index
    %229 = vector.load %arg6[%228, %c0_65, %c0_66] : memref<8x8x32xbf16, #tpu.memory_space<vmem>>, vector<1x8x32xbf16>
    %230 = vector.shape_cast %229 : vector<1x8x32xbf16> to vector<8x32xbf16>
    %231 = vector.shape_cast %227 : vector<8x32xbf16> to vector<1x8x32xbf16>
    tpu.vector_store %arg6[%228, %c0_65, %c0_66], %231 {strides = array<i32>} : memref<8x8x32xbf16, #tpu.memory_space<vmem>>, vector<1x8x32xbf16>,
    %c5_i32 = arith.constant 5 : i32
    %232 = arith.index_cast %c5_i32 : i32 to index
    %c0_67 = arith.constant 0 : index
    %c0_68 = arith.constant 0 : index
    %233 = vector.load %arg7[%232, %c0_67, %c0_68] : memref<8x8x128xbf16, #tpu.memory_space<vmem>>, vector<1x8x128xbf16>
    %234 = vector.shape_cast %233 : vector<1x8x128xbf16> to vector<8x128xbf16>
    %235 = arith.extf %234 : vector<8x128xbf16> to vector<8x128xf32>
    %236 = arith.truncf %220 : vector<8x32xf32> to vector<8x32xbf16>
    %c0_69 = arith.constant 0 : index
    %c0_70 = arith.constant 0 : index
    %237 = vector.load %arg4[%c0_69, %c0_70] : memref<32x128xbf16, #tpu.memory_space<vmem>>, vector<32x128xbf16>
    %cst_71 = arith.constant dense<0.000000e+00> : vector<8x128xf32>
    %238 = tpu.matmul %236, %237, %cst_71 {dimension_numbers = #tpu.dot_dimension_numbers<[1], [0], [0], [1], [0, 0, 1, 1], [], []>} : vector<8x32xbf16>, vector<32x128xbf16>, vector<8x128xf32> -> vector<8x128xf32>
    %239 = arith.addf %235, %238 : vector<8x128xf32>
    %240 = vector.extract_strided_slice %239 {offsets = [0, 0], sizes = [8, 32], strides = [1, 1]} : vector<8x128xf32> to vector<8x32xf32>
    %241 = arith.negf %240 : vector<8x32xf32>
    %242 = math.exp %241 : vector<8x32xf32>
    %cst_72 = arith.constant 1.000000e+00 : f32
    %243 = vector.broadcast %cst_72 : f32 to vector<8x32xf32>
    %244 = arith.addf %243, %242 : vector<8x32xf32>
    %245 = arith.divf %243, %244 : vector<8x32xf32>
    %246 = vector.extract_strided_slice %239 {offsets = [0, 32], sizes = [8, 32], strides = [1, 1]} : vector<8x128xf32> to vector<8x32xf32>
    %247 = arith.negf %246 : vector<8x32xf32>
    %248 = math.exp %247 : vector<8x32xf32>
    %cst_73 = arith.constant 1.000000e+00 : f32
    %249 = vector.broadcast %cst_73 : f32 to vector<8x32xf32>
    %250 = arith.addf %249, %248 : vector<8x32xf32>
    %251 = arith.divf %249, %250 : vector<8x32xf32>
    %252 = vector.extract_strided_slice %239 {offsets = [0, 64], sizes = [8, 32], strides = [1, 1]} : vector<8x128xf32> to vector<8x32xf32>
    %253 = math.tanh %252 : vector<8x32xf32>
    %254 = vector.extract_strided_slice %239 {offsets = [0, 96], sizes = [8, 32], strides = [1, 1]} : vector<8x128xf32> to vector<8x32xf32>
    %255 = arith.negf %254 : vector<8x32xf32>
    %256 = math.exp %255 : vector<8x32xf32>
    %cst_74 = arith.constant 1.000000e+00 : f32
    %257 = vector.broadcast %cst_74 : f32 to vector<8x32xf32>
    %258 = arith.addf %257, %256 : vector<8x32xf32>
    %259 = arith.divf %257, %258 : vector<8x32xf32>
    %260 = arith.mulf %251, %218 : vector<8x32xf32>
    %261 = arith.mulf %245, %253 : vector<8x32xf32>
    %262 = arith.addf %260, %261 : vector<8x32xf32>
    %263 = math.tanh %262 : vector<8x32xf32>
    %264 = arith.mulf %259, %263 : vector<8x32xf32>
    %265 = vector.broadcast %c5_i32 : i32 to vector<8x1xi32>
    %266 = arith.cmpi slt, %265, %10 : vector<8x1xi32>
    %cst_75 = arith.constant 0.000000e+00 : f32
    %267 = vector.shape_cast %266 : vector<8x1xi1> to vector<8x1xi1>
    %268 = vector.broadcast %267 : vector<8x1xi1> to vector<8x32xi1>
    %269 = vector.broadcast %cst_75 : f32 to vector<8x32xf32>
    %270 = arith.select %268, %264, %269 : vector<8x32xi1>, vector<8x32xf32>
    %271 = arith.truncf %270 : vector<8x32xf32> to vector<8x32xbf16>
    %272 = arith.index_cast %c5_i32 : i32 to index
    %c0_76 = arith.constant 0 : index
    %c0_77 = arith.constant 0 : index
    %273 = vector.load %arg6[%272, %c0_76, %c0_77] : memref<8x8x32xbf16, #tpu.memory_space<vmem>>, vector<1x8x32xbf16>
    %274 = vector.shape_cast %273 : vector<1x8x32xbf16> to vector<8x32xbf16>
    %275 = vector.shape_cast %271 : vector<8x32xbf16> to vector<1x8x32xbf16>
    tpu.vector_store %arg6[%272, %c0_76, %c0_77], %275 {strides = array<i32>} : memref<8x8x32xbf16, #tpu.memory_space<vmem>>, vector<1x8x32xbf16>,
    %c6_i32 = arith.constant 6 : i32
    %276 = arith.index_cast %c6_i32 : i32 to index
    %c0_78 = arith.constant 0 : index
    %c0_79 = arith.constant 0 : index
    %277 = vector.load %arg7[%276, %c0_78, %c0_79] : memref<8x8x128xbf16, #tpu.memory_space<vmem>>, vector<1x8x128xbf16>
    %278 = vector.shape_cast %277 : vector<1x8x128xbf16> to vector<8x128xbf16>
    %279 = arith.extf %278 : vector<8x128xbf16> to vector<8x128xf32>
    %280 = arith.truncf %264 : vector<8x32xf32> to vector<8x32xbf16>
    %c0_80 = arith.constant 0 : index
    %c0_81 = arith.constant 0 : index
    %281 = vector.load %arg4[%c0_80, %c0_81] : memref<32x128xbf16, #tpu.memory_space<vmem>>, vector<32x128xbf16>
    %cst_82 = arith.constant dense<0.000000e+00> : vector<8x128xf32>
    %282 = tpu.matmul %280, %281, %cst_82 {dimension_numbers = #tpu.dot_dimension_numbers<[1], [0], [0], [1], [0, 0, 1, 1], [], []>} : vector<8x32xbf16>, vector<32x128xbf16>, vector<8x128xf32> -> vector<8x128xf32>
    %283 = arith.addf %279, %282 : vector<8x128xf32>
    %284 = vector.extract_strided_slice %283 {offsets = [0, 0], sizes = [8, 32], strides = [1, 1]} : vector<8x128xf32> to vector<8x32xf32>
    %285 = arith.negf %284 : vector<8x32xf32>
    %286 = math.exp %285 : vector<8x32xf32>
    %cst_83 = arith.constant 1.000000e+00 : f32
    %287 = vector.broadcast %cst_83 : f32 to vector<8x32xf32>
    %288 = arith.addf %287, %286 : vector<8x32xf32>
    %289 = arith.divf %287, %288 : vector<8x32xf32>
    %290 = vector.extract_strided_slice %283 {offsets = [0, 32], sizes = [8, 32], strides = [1, 1]} : vector<8x128xf32> to vector<8x32xf32>
    %291 = arith.negf %290 : vector<8x32xf32>
    %292 = math.exp %291 : vector<8x32xf32>
    %cst_84 = arith.constant 1.000000e+00 : f32
    %293 = vector.broadcast %cst_84 : f32 to vector<8x32xf32>
    %294 = arith.addf %293, %292 : vector<8x32xf32>
    %295 = arith.divf %293, %294 : vector<8x32xf32>
    %296 = vector.extract_strided_slice %283 {offsets = [0, 64], sizes = [8, 32], strides = [1, 1]} : vector<8x128xf32> to vector<8x32xf32>
    %297 = math.tanh %296 : vector<8x32xf32>
    %298 = vector.extract_strided_slice %283 {offsets = [0, 96], sizes = [8, 32], strides = [1, 1]} : vector<8x128xf32> to vector<8x32xf32>
    %299 = arith.negf %298 : vector<8x32xf32>
    %300 = math.exp %299 : vector<8x32xf32>
    %cst_85 = arith.constant 1.000000e+00 : f32
    %301 = vector.broadcast %cst_85 : f32 to vector<8x32xf32>
    %302 = arith.addf %301, %300 : vector<8x32xf32>
    %303 = arith.divf %301, %302 : vector<8x32xf32>
    %304 = arith.mulf %295, %262 : vector<8x32xf32>
    %305 = arith.mulf %289, %297 : vector<8x32xf32>
    %306 = arith.addf %304, %305 : vector<8x32xf32>
    %307 = math.tanh %306 : vector<8x32xf32>
    %308 = arith.mulf %303, %307 : vector<8x32xf32>
    %309 = vector.broadcast %c6_i32 : i32 to vector<8x1xi32>
    %310 = arith.cmpi slt, %309, %10 : vector<8x1xi32>
    %cst_86 = arith.constant 0.000000e+00 : f32
    %311 = vector.shape_cast %310 : vector<8x1xi1> to vector<8x1xi1>
    %312 = vector.broadcast %311 : vector<8x1xi1> to vector<8x32xi1>
    %313 = vector.broadcast %cst_86 : f32 to vector<8x32xf32>
    %314 = arith.select %312, %308, %313 : vector<8x32xi1>, vector<8x32xf32>
    %315 = arith.truncf %314 : vector<8x32xf32> to vector<8x32xbf16>
    %316 = arith.index_cast %c6_i32 : i32 to index
    %c0_87 = arith.constant 0 : index
    %c0_88 = arith.constant 0 : index
    %317 = vector.load %arg6[%316, %c0_87, %c0_88] : memref<8x8x32xbf16, #tpu.memory_space<vmem>>, vector<1x8x32xbf16>
    %318 = vector.shape_cast %317 : vector<1x8x32xbf16> to vector<8x32xbf16>
    %319 = vector.shape_cast %315 : vector<8x32xbf16> to vector<1x8x32xbf16>
    tpu.vector_store %arg6[%316, %c0_87, %c0_88], %319 {strides = array<i32>} : memref<8x8x32xbf16, #tpu.memory_space<vmem>>, vector<1x8x32xbf16>,
    %c7_i32 = arith.constant 7 : i32
    %320 = arith.index_cast %c7_i32 : i32 to index
    %c0_89 = arith.constant 0 : index
    %c0_90 = arith.constant 0 : index
    %321 = vector.load %arg7[%320, %c0_89, %c0_90] : memref<8x8x128xbf16, #tpu.memory_space<vmem>>, vector<1x8x128xbf16>
    %322 = vector.shape_cast %321 : vector<1x8x128xbf16> to vector<8x128xbf16>
    %323 = arith.extf %322 : vector<8x128xbf16> to vector<8x128xf32>
    %324 = arith.truncf %308 : vector<8x32xf32> to vector<8x32xbf16>
    %c0_91 = arith.constant 0 : index
    %c0_92 = arith.constant 0 : index
    %325 = vector.load %arg4[%c0_91, %c0_92] : memref<32x128xbf16, #tpu.memory_space<vmem>>, vector<32x128xbf16>
    %cst_93 = arith.constant dense<0.000000e+00> : vector<8x128xf32>
    %326 = tpu.matmul %324, %325, %cst_93 {dimension_numbers = #tpu.dot_dimension_numbers<[1], [0], [0], [1], [0, 0, 1, 1], [], []>} : vector<8x32xbf16>, vector<32x128xbf16>, vector<8x128xf32> -> vector<8x128xf32>
    %327 = arith.addf %323, %326 : vector<8x128xf32>
    %328 = vector.extract_strided_slice %327 {offsets = [0, 0], sizes = [8, 32], strides = [1, 1]} : vector<8x128xf32> to vector<8x32xf32>
    %329 = arith.negf %328 : vector<8x32xf32>
    %330 = math.exp %329 : vector<8x32xf32>
    %cst_94 = arith.constant 1.000000e+00 : f32
    %331 = vector.broadcast %cst_94 : f32 to vector<8x32xf32>
    %332 = arith.addf %331, %330 : vector<8x32xf32>
    %333 = arith.divf %331, %332 : vector<8x32xf32>
    %334 = vector.extract_strided_slice %327 {offsets = [0, 32], sizes = [8, 32], strides = [1, 1]} : vector<8x128xf32> to vector<8x32xf32>
    %335 = arith.negf %334 : vector<8x32xf32>
    %336 = math.exp %335 : vector<8x32xf32>
    %cst_95 = arith.constant 1.000000e+00 : f32
    %337 = vector.broadcast %cst_95 : f32 to vector<8x32xf32>
    %338 = arith.addf %337, %336 : vector<8x32xf32>
    %339 = arith.divf %337, %338 : vector<8x32xf32>
    %340 = vector.extract_strided_slice %327 {offsets = [0, 64], sizes = [8, 32], strides = [1, 1]} : vector<8x128xf32> to vector<8x32xf32>
    %341 = math.tanh %340 : vector<8x32xf32>
    %342 = vector.extract_strided_slice %327 {offsets = [0, 96], sizes = [8, 32], strides = [1, 1]} : vector<8x128xf32> to vector<8x32xf32>
    %343 = arith.negf %342 : vector<8x32xf32>
    %344 = math.exp %343 : vector<8x32xf32>
    %cst_96 = arith.constant 1.000000e+00 : f32
    %345 = vector.broadcast %cst_96 : f32 to vector<8x32xf32>
    %346 = arith.addf %345, %344 : vector<8x32xf32>
    %347 = arith.divf %345, %346 : vector<8x32xf32>
    %348 = arith.mulf %339, %306 : vector<8x32xf32>
    %349 = arith.mulf %333, %341 : vector<8x32xf32>
    %350 = arith.addf %348, %349 : vector<8x32xf32>
    %351 = math.tanh %350 : vector<8x32xf32>
    %352 = arith.mulf %347, %351 : vector<8x32xf32>
    %353 = vector.broadcast %c7_i32 : i32 to vector<8x1xi32>
    %354 = arith.cmpi slt, %353, %10 : vector<8x1xi32>
    %cst_97 = arith.constant 0.000000e+00 : f32
    %355 = vector.shape_cast %354 : vector<8x1xi1> to vector<8x1xi1>
    %356 = vector.broadcast %355 : vector<8x1xi1> to vector<8x32xi1>
    %357 = vector.broadcast %cst_97 : f32 to vector<8x32xf32>
    %358 = arith.select %356, %352, %357 : vector<8x32xi1>, vector<8x32xf32>
    %359 = arith.truncf %358 : vector<8x32xf32> to vector<8x32xbf16>
    %360 = arith.index_cast %c7_i32 : i32 to index
    %c0_98 = arith.constant 0 : index
    %c0_99 = arith.constant 0 : index
    %361 = vector.load %arg6[%360, %c0_98, %c0_99] : memref<8x8x32xbf16, #tpu.memory_space<vmem>>, vector<1x8x32xbf16>
    %362 = vector.shape_cast %361 : vector<1x8x32xbf16> to vector<8x32xbf16>
    %363 = vector.shape_cast %359 : vector<8x32xbf16> to vector<1x8x32xbf16>
    tpu.vector_store %arg6[%360, %c0_98, %c0_99], %363 {strides = array<i32>} : memref<8x8x32xbf16, #tpu.memory_space<vmem>>, vector<1x8x32xbf16>,
    %c8_i32 = arith.constant 8 : i32
    return
  }
  func.func @transform_0(%arg0: i32) -> (i32, i32, i32) {
    %c0_i32 = arith.constant 0 : i32
    %c0_i32_0 = arith.constant 0 : i32
    %c0_i32_1 = arith.constant 0 : i32
    return %c0_i32, %arg0, %c0_i32_0 : i32, i32, i32
  }
  func.func @transform_1(%arg0: i32) -> (i32, i32) {
    %c0_i32 = arith.constant 0 : i32
    %c0_i32_0 = arith.constant 0 : i32
    %c0_i32_1 = arith.constant 0 : i32
    return %c0_i32, %c0_i32_0 : i32, i32
  }
  func.func @transform_2(%arg0: i32) -> (i32, i32) {
    %c0_i32 = arith.constant 0 : i32
    %c0_i32_0 = arith.constant 0 : i32
    %c0_i32_1 = arith.constant 0 : i32
    return %c0_i32, %c0_i32_0 : i32, i32
  }
  func.func @transform_3(%arg0: i32) -> (i32, i32) {
    %c0_i32 = arith.constant 0 : i32
    %c0_i32_0 = arith.constant 0 : i32
    %c0_i32_1 = arith.constant 0 : i32
    return %c0_i32, %c0_i32_0 : i32, i32
  }
  func.func @transform_4(%arg0: i32) -> (i32, i32) {
    %c0_i32 = arith.constant 0 : i32
    %c0_i32_0 = arith.constant 0 : i32
    return %arg0, %c0_i32 : i32, i32
  }
  func.func @transform_5(%arg0: i32) -> (i32, i32, i32) {
    %c0_i32 = arith.constant 0 : i32
    %c0_i32_0 = arith.constant 0 : i32
    %c0_i32_1 = arith.constant 0 : i32
    return %c0_i32, %arg0, %c0_i32_0 : i32, i32, i32
  }
}

</mosaic_0001>

<bundles_post_ra>
// kernel: tpu_custom_call.1
= control target key start
LH: loop header
LB: loop body
LE: loop exit
PB: predicated region body
PF: predicated region fallthrough
CT: control target
= control target key end

     0   :  { %10 = vsyncpa [#allocation4], 0  ;;  %s1453_s0 = inlined_call_operand.hbm [shape: bf16[8,8,32], index: 0, kind: input, shape index: {}]   ;;  %s1454_s1 = inlined_call_operand.hbm [shape: bf16[32,128], index: 1, kind: input, shape index: {}]   ;;  %s1455_s2 = inlined_call_operand.vmem [shape: f32[1,128], index: 2, kind: input, shape index: {}]   ;;  %s1456_s3 = inlined_call_operand.hbm [shape: bf16[32,128], index: 3, kind: input, shape index: {}]   ;;  %s1457_s4 = inlined_call_operand.vmem [shape: s32[8,1], index: 4, kind: input, shape index: {}]   ;;  %s1458_s5 = inlined_call_operand.hbm [shape: bf16[8,8,32], index: 5, kind: output, shape index: {}]  }
   0x1   :  { %11 = vsyncpa [#allocation7], 0 }
   0x2   :  { %12 = vsyncpa [#allocation5], 0  ;;  %s30_s20 = sshll.u32 %s1454_s1, 4  ;;  %s1251_s21 = smov [#allocation6]   ;;  %s31_s20 = int_to_ptr.hbm [resolvable:$true] %s30_s20 }
   0x3   :  { %s32_s22 = sshll.u32 %s1251_s21, 4  ;;  %s17_s25 = sshll.u32 %s1453_s0, 4  ;;  %s33_s22 = int_to_ptr.vmem [resolvable:$true] %s32_s22  ;;  %s18_s25 = int_to_ptr.hbm [resolvable:$true] %s17_s25 }
   0x4   :  { %s1252_s26 = smov 64   ;;  %s1253_s27 = smov 4  }
   0x5   :  { %38 = dma.hbm_to_vmem [thread:$0]  %s31_s20, 256, %s33_s22, [#allocation7], %s1252_s26, %s1252_s26, %s1253_s27  }
   0x6   :  { %s1254_s28 = smov [#allocation3]   ;;  %s45_s1 = sshll.u32 %s1456_s3, 4  ;;  %s46_s1 = int_to_ptr.hbm [resolvable:$true] %s45_s1 }
   0x7   :  { %s19_s29 = sshll.u32 %s1254_s28, 4  ;;  %s1255_s0 = smov [#allocation8]   ;;  %s20_s29 = int_to_ptr.vmem [resolvable:$true] %s19_s29 }
   0x8   :  { %25 = dma.hbm_to_vmem [thread:$0]  %s18_s25, 512, %s20_s29, [#allocation4], %s1252_s26, %s1252_s26, %s1253_s27  }
   0x9   :  { %s47_s7 = sshll.u32 %s1255_s0, 4  ;;  %s48_s7 = int_to_ptr.vmem [resolvable:$true] %s47_s7 }
   0xa   :  { %53 = dma.hbm_to_vmem [thread:$0]  %s46_s1, 256, %s48_s7, [#allocation7], %s1252_s26, %s1252_s26, %s1253_s27  }
   0xb   :  { %1245 = dma.done.wait [#allocation4], 512  }
   0xc   :  { %1246 = vsyncadd [#allocation4], 4294966784 }
   0xd   :  { %1247 = dma.done.wait [#allocation7], 512  }
   0xe   :  { %1248 = vsyncadd [#allocation7], 4294966784  ;;  %v1256_v0 = vmov 0   ;;  %v1031_v1 = vld [vmem:[#allocation6 + $0x8] sm:$0xff]  ;;  %v1033_v2 = vld [vmem:[#allocation8 + $0x8] sm:$0xff]  ;;  %vm117_vm0 = vcmask 261120  }
   0xf   :  { %1083 = vset.pattern.permute.xlu0 %v1256_v0  ;;  %1081 = vset.pattern.permute.xlu1 %v1256_v0  ;;  %v1030_v3 = vld [vmem:[#allocation6] sm:$0xff]  ;;  %v1032_v4 = vld [vmem:[#allocation8] sm:$0xff]  ;;  %v1035_v37 = vld [vmem:[#allocation8 + $0x8] sm:$0xff]  ;;  %s905_s14 = sshll.u32 %s1458_s5, 4  ;;  %s906_s14 = int_to_ptr.hbm [resolvable:$true] %s905_s14 }
  0x10   :  { %1082 = vset.pattern.permute.xlu2 %v1256_v0  ;;  %136 = vmatpush.bf16.msra.mxu0 %v1031_v1  ;;  %v1026_v5 = vld [vmem:[#allocation3] sm:$0xff]  ;;  %v1034_v38 = vld [vmem:[#allocation8] sm:$0xff] }
  0x11   :  { %1071 = vmatpush.bf16.msra.mxu3 %v1031_v1  ;;  %203 = vmatpush.bf16.msra.mxu1 %v1033_v2  ;;  %v1315_v8 = vld [vmem:[%s1455_s2] ss:$0 sm:$0xff]  ;;  %s1257_s2 = smov 32  }
  0x12   :  { %294 = vmatpush.bf16.msra.mxu2 %v1035_v37 }
  0x14   :  { %137 = vmatpush.bf16.msra.mxu0 %v1030_v3 }
  0x15   :  { %1072 = vmatpush.bf16.msra.mxu3 %v1030_v3  ;;  %204 = vmatpush.bf16.msra.mxu1 %v1032_v4  ;;  %v1027_v4 = vld [vmem:[#allocation3 + $0x8] sm:$0xff] }
  0x16   :  { %295 = vmatpush.bf16.msra.mxu2 %v1034_v38 }
  0x17   :  { %943 = vmatmul.msk.bf16.vlgmr.msra.gmra.mxu0 %vm117_vm0, %v1026_v5  ;;  %v1029_v5 = vld [vmem:[#allocation3 + $0x18] sm:$0xff] }
  0x18   :  { %205 = vmatmul.bf16.vlgmr.msra.gmra.mxu1 %v1256_v0  ;;  %946 = vmatmul.msk.bf16.vlgmr.msra.gmra.mxu3 %vm117_vm0, %v1029_v5 }
  0x27   :  { %944 = vmatmul.msk.bf16.gmra.mxu0 %vm117_vm0, %v1027_v4 }
  0x94   :  { %v139_v6 = vpop.f32.mrf.mxu0 }
  0x95   :  { %v206_v7 = vpop.f32.mrf.mxu1  ;;  %v140_v10 = vadd.f32 %v1315_v8, %v139_v6  ;;  %v1037_v6 = vld [vmem:[#allocation8 + $0x8] sm:$0xff] }
  0x96   :  { %385 = vmatpush.bf16.msrb.mxu3 %v1037_v6 }
  0x9c   :  { %v141_v9 = vpop.f32.mrf.mxu0 }
  0x9d   :  { %v142_v11 = vadd.f32 %v1315_v8, %v141_v9  ;;  %v208_v12 = vpop.f32.mrf.mxu1 }
  0x9f   :  { %v1051_v13 = vpack.c.bf16 %v142_v11, %v140_v10 }
  0xa1   :  { %1052 = vst [vmem:[#allocation2] sm:$0xff] %v1051_v13   ;;  %v154_v13 = vpop.f32.mrf.mxu3 }
  0xa4   :  { %v144_v12 = vpop.f32.mrf.mxu0 }
  0xa8   :  { %v176_v14 = vld [vmem:[#allocation2] sm:$0xff]  }
  0xa9   :  { %v177_v15 = vunpack.c.l.bf16 %v176_v14  ;;  %v264_v43 = vunpack.c.h.bf16 %v176_v14  ;;  %v145_v14 = vadd.f32 %v1315_v8, %v144_v12 }
  0xab   :  { %v210_v16 = vadd.f32 %v206_v7, %v177_v15  ;;  %v1036_v7 = vld [vmem:[#allocation8] sm:$0xff] }
  0xac   :  { %386 = vmatpush.bf16.msrb.mxu3 %v1036_v7  ;;  %v146_v15 = vpop.f32.mrf.mxu0 }
  0xad   :  { %1085 = vtanh.f32 %v210_v16  ;;  %v955_v18 = vmul.f32 -1.442695, %v210_v16  ;;  %v147_v16 = vadd.f32 %v1315_v8, %v146_v15 }
  0xaf   :  { %1087 = vpow2.f32 %v955_v18  ;;  %v155_v18 = vadd.f32 %v1315_v8, %v154_v13 }
  0xb3   :  { %v1086_v17 = vpop.eup %1085 }
  0xb4   :  { %233 = vrot.lane.b32.xlu0 %v1086_v17, %s1252_s26  ;;  %v1056_v17 = vpack.c.bf16 %v147_v16, %v145_v14 }
  0xb5   :  { %v1088_v19 = vpop.eup %1087 }
  0xb6   :  { %v214_v20 = vadd.f32 1.0, %v1088_v19  ;;  %1068 = vst [vmem:[#allocation2 + $0x8] sm:$0xff] %v1056_v17   ;;  %v156_v19 = vpop.f32.mrf.mxu3 }
  0xb8   :  { %1089 = vrcp.f32 %v214_v20  ;;  %v226_v26 = vand.u32 2147483648, %v214_v20  ;;  %vm220_vm2 = vweird.f32 %v214_v20  ;;  %v224_v27 = vand.u32 2147483647, %v214_v20 }
  0xba   :  { %v227_v29 = vor.u32 1.1754944e-38, %v226_v26  ;;  %vm225_vm4 = vcmp.eq.f32.partialorder %v224_v27, 8.507059e+37 }
  0xbe   :  { %v1090_v21 = vpop.eup %1089 }
  0xbf   :  { %v216_v22 = vmul.f32 %v1090_v21, %v214_v20  ;;  %vm221_vm1 = vweird.f32 %v1090_v21  ;;  %v157_v20 = vadd.f32 %v1315_v8, %v156_v19  ;;  %v1041_v19 = vld [vmem:[#allocation8 + $0x8] sm:$0xff] }
  0xc0   :  { %vm222_vm3 = vmor %vm220_vm2, %vm221_vm1  ;;  %567 = vmatpush.bf16.msrb.mxu2 %v1041_v19 }
  0xc1   :  { %v217_v23 = vsub.f32 1.0, %v216_v22 }
  0xc3   :  { %v218_v24 = vmul.f32 %v1090_v21, %v217_v23  ;;  %v354_v23 = vld [vmem:[#allocation2 + $0x8] sm:$0xff]  }
  0xc5   :  { %v219_v25 = vadd.f32 %v1090_v21, %v218_v24  ;;  %v355_v24 = vunpack.c.l.bf16 %v354_v23 }
  0xc7   :  { %v223_v28 = vsel %vm222_vm3, %v1090_v21, %v219_v25  ;;  %v1066_v21 = vpack.c.bf16 %v157_v20, %v155_v18  ;;  %v1028_v18 = vld [vmem:[#allocation3 + $0x10] sm:$0xff] }
  0xc8   :  { %v228_v31 = vsel %vm225_vm4, %v227_v29, %v223_v28  ;;  %945 = vmatmul.msk.bf16.gmra.mxu0 %vm117_vm0, %v1028_v18  ;;  %v1040_v20 = vld [vmem:[#allocation8] sm:$0xff] }
  0xc9   :  { %v231_v33 = vmul.f32 0.0, %v228_v31  ;;  %1070 = vst [vmem:[#allocation2 + $0x18] sm:$0xff] %v1066_v21   ;;  %568 = vmatpush.bf16.msrb.mxu2 %v1040_v20 }
 0x126   :  { %v234_v30 = vpop.permute.xlu0 %233 }
 0x127   :  { %v236_v32 = vmul.f32 %v234_v30, %v228_v31 }
 0x129   :  { %238 = vrot.lane.b32.xlu0 %v236_v32, %s1257_s2 }
 0x19b   :  { %v239_v34 = vpop.permute.xlu0 %238 }
 0x19c   :  { %v241_v35 = vadd.f32 %v239_v34, %v231_v33 }
 0x19e   :  { %1091 = vtanh.f32 %v241_v35 }
 0x1a4   :  { %v1092_v36 = vpop.eup %1091 }
 0x1a5   :  { %244 = vrot.lane.b32.xlu1 %v1092_v36, %s1252_s26 }
 0x217   :  { %v245_v39 = vpop.permute.xlu1 %244 }
 0x218   :  { %v1322_v40 = vmul.f32 %v245_v39, %v228_v31 }
 0x21a   :  { %v265_v41 = vpack.c.bf16 %v1322_v40, %v1322_v40 }
 0x21c   :  { %271 = vrot.lane.b32.xlu1 %v265_v41, %s1257_s2 }
 0x28e   :  { %v272_v42 = vpop.permute.xlu1 %271 }
 0x28f   :  { %964 = vmatmul.msk.bf16.vlgmr.msra.gmra.mxu2 %vm117_vm0, %v272_v42 }
 0x312   :  { %v297_v44 = vpop.f32.mrf.mxu2 }
 0x313   :  { %v301_v45 = vadd.f32 %v297_v44, %v264_v43 }
 0x315   :  { %1093 = vtanh.f32 %v301_v45  ;;  %v965_v48 = vmul.f32 -1.442695, %v301_v45 }
 0x317   :  { %1095 = vpow2.f32 %v965_v48 }
 0x31a   :  { %v299_v46 = vpop.f32.mrf.mxu2 }
 0x31b   :  { %v1094_v47 = vpop.eup %1093 }
 0x31c   :  { %324 = vrot.lane.b32.xlu2 %v1094_v47, %s1252_s26 }
 0x31d   :  { %v1096_v49 = vpop.eup %1095 }
 0x31e   :  { %v305_v50 = vadd.f32 1.0, %v1096_v49  ;;  %v1039_v49 = vld [vmem:[#allocation8 + $0x8] sm:$0xff] }
 0x31f   :  { %476 = vmatpush.bf16.msrb.mxu1 %v1039_v49 }
 0x320   :  { %1097 = vrcp.f32 %v305_v50  ;;  %v317_v56 = vand.u32 2147483648, %v305_v50  ;;  %vm311_vm6 = vweird.f32 %v305_v50  ;;  %v315_v57 = vand.u32 2147483647, %v305_v50 }
 0x322   :  { %v318_v59 = vor.u32 1.1754944e-38, %v317_v56  ;;  %vm316_vm8 = vcmp.eq.f32.partialorder %v315_v57, 8.507059e+37 }
 0x326   :  { %v1098_v51 = vpop.eup %1097 }
 0x327   :  { %v307_v52 = vmul.f32 %v1098_v51, %v305_v50  ;;  %vm312_vm5 = vweird.f32 %v1098_v51  ;;  %v1038_v50 = vld [vmem:[#allocation8] sm:$0xff] }
 0x328   :  { %vm313_vm7 = vmor %vm311_vm6, %vm312_vm5  ;;  %477 = vmatpush.bf16.msrb.mxu1 %v1038_v50 }
 0x329   :  { %v308_v53 = vsub.f32 1.0, %v307_v52 }
 0x32b   :  { %v309_v54 = vmul.f32 %v1098_v51, %v308_v53 }
 0x32d   :  { %v310_v55 = vadd.f32 %v1098_v51, %v309_v54 }
 0x32f   :  { %v314_v58 = vsel %vm313_vm7, %v1098_v51, %v310_v55  ;;  %v446_v55 = vunpack.c.h.bf16 %v354_v23 }
 0x330   :  { %v319_v61 = vsel %vm316_vm8, %v318_v59, %v314_v58 }
 0x331   :  { %v322_v63 = vmul.f32 %v319_v61, %v241_v35 }
 0x376   :  { %v325_v60 = vpop.permute.xlu2 %324 }
 0x377   :  { %v327_v62 = vmul.f32 %v325_v60, %v319_v61 }
 0x379   :  { %329 = vrot.lane.b32.xlu2 %v327_v62, %s1257_s2 }
 0x3d3   :  { %v330_v1 = vpop.permute.xlu2 %329 }
 0x3d4   :  { %v332_v2 = vadd.f32 %v330_v1, %v322_v63 }
 0x3d6   :  { %1099 = vtanh.f32 %v332_v2 }
 0x3dc   :  { %v1100_v3 = vpop.eup %1099 }
 0x3dd   :  { %335 = vrot.lane.b32.xlu0 %v1100_v3, %s1252_s26 }
 0x44f   :  { %v336_v9 = vpop.permute.xlu0 %335 }
 0x450   :  { %v1333_v10 = vmul.f32 %v336_v9, %v319_v61 }
 0x452   :  { %v356_v11 = vpack.c.bf16 %v1333_v10, %v1333_v10 }
 0x454   :  { %362 = vrot.lane.b32.xlu1 %v356_v11, %s1257_s2 }
 0x4c6   :  { %v363_v22 = vpop.permute.xlu1 %362 }
 0x4c7   :  { %974 = vmatmul.msk.bf16.vlgmr.msrb.gmra.mxu3 %vm117_vm0, %v363_v22 }
 0x54a   :  { %v388_v25 = vpop.f32.mrf.mxu3 }
 0x54b   :  { %v392_v26 = vadd.f32 %v388_v25, %v355_v24  ;;  %v149_v24 = vpop.f32.mrf.mxu0 }
 0x54c   :  { %v150_v25 = vadd.f32 %v1315_v8, %v149_v24 }
 0x54d   :  { %1101 = vtanh.f32 %v392_v26  ;;  %v975_v29 = vmul.f32 -1.442695, %v392_v26 }
 0x54f   :  { %1103 = vpow2.f32 %v975_v29 }
 0x552   :  { %v390_v27 = vpop.f32.mrf.mxu3 }
 0x553   :  { %v1102_v28 = vpop.eup %1101  ;;  %v151_v26 = vpop.f32.mrf.mxu0 }
 0x554   :  { %415 = vrot.lane.b32.xlu2 %v1102_v28, %s1252_s26  ;;  %v152_v27 = vadd.f32 %v1315_v8, %v151_v26  ;;  %v1045_v26 = vld [vmem:[#allocation8 + $0x8] sm:$0xff] }
 0x555   :  { %v1104_v30 = vpop.eup %1103  ;;  %749 = vmatpush.bf16.msra.mxu1 %v1045_v26 }
 0x556   :  { %v396_v31 = vadd.f32 1.0, %v1104_v30  ;;  %v1061_v28 = vpack.c.bf16 %v152_v27, %v150_v25  ;;  %v1044_v27 = vld [vmem:[#allocation8] sm:$0xff] }
 0x558   :  { %1105 = vrcp.f32 %v396_v31  ;;  %v408_v37 = vand.u32 2147483648, %v396_v31  ;;  %vm402_vm10 = vweird.f32 %v396_v31  ;;  %v406_v38 = vand.u32 2147483647, %v396_v31  ;;  %1069 = vst [vmem:[#allocation2 + $0x10] sm:$0xff] %v1061_v28  }
 0x559   :  { %750 = vmatpush.bf16.msra.mxu1 %v1044_v27 }
 0x55a   :  { %v409_v41 = vor.u32 1.1754944e-38, %v408_v37  ;;  %vm407_vm12 = vcmp.eq.f32.partialorder %v406_v38, 8.507059e+37 }
 0x55e   :  { %v1106_v32 = vpop.eup %1105 }
 0x55f   :  { %v398_v33 = vmul.f32 %v1106_v32, %v396_v31  ;;  %vm403_vm9 = vweird.f32 %v1106_v32  ;;  %v536_v30 = vld [vmem:[#allocation2 + $0x10] sm:$0xff]  }
 0x560   :  { %vm404_vm11 = vmor %vm402_vm10, %vm403_vm9  ;;  %v537_v31 = vunpack.c.l.bf16 %v536_v30 }
 0x561   :  { %v399_v34 = vsub.f32 1.0, %v398_v33 }
 0x563   :  { %v400_v35 = vmul.f32 %v1106_v32, %v399_v34 }
 0x565   :  { %v401_v36 = vadd.f32 %v1106_v32, %v400_v35 }
 0x567   :  { %v405_v39 = vsel %vm404_vm11, %v1106_v32, %v401_v36 }
 0x568   :  { %v410_v43 = vsel %vm407_vm12, %v409_v41, %v405_v39 }
 0x569   :  { %v413_v45 = vmul.f32 %v410_v43, %v332_v2 }
 0x5ae   :  { %v416_v42 = vpop.permute.xlu2 %415 }
 0x5af   :  { %v418_v44 = vmul.f32 %v416_v42, %v410_v43 }
 0x5b1   :  { %420 = vrot.lane.b32.xlu0 %v418_v44, %s1257_s2 }
 0x623   :  { %v421_v46 = vpop.permute.xlu0 %420 }
 0x624   :  { %v423_v47 = vadd.f32 %v421_v46, %v413_v45 }
 0x626   :  { %1107 = vtanh.f32 %v423_v47 }
 0x62c   :  { %v1108_v48 = vpop.eup %1107 }
 0x62d   :  { %426 = vrot.lane.b32.xlu1 %v1108_v48, %s1252_s26 }
 0x69f   :  { %v427_v51 = vpop.permute.xlu1 %426 }
 0x6a0   :  { %v1346_v52 = vmul.f32 %v427_v51, %v410_v43 }
 0x6a2   :  { %v447_v53 = vpack.c.bf16 %v1346_v52, %v1346_v52 }
 0x6a4   :  { %453 = vrot.lane.b32.xlu2 %v447_v53, %s1257_s2 }
 0x6fe   :  { %v454_v54 = vpop.permute.xlu2 %453 }
 0x6ff   :  { %984 = vmatmul.msk.bf16.vlgmr.msrb.gmra.mxu1 %vm117_vm0, %v454_v54 }
 0x77c   :  { %v479_v56 = vpop.f32.mrf.mxu1 }
 0x77d   :  { %v483_v57 = vadd.f32 %v479_v56, %v446_v55  ;;  %v1043_v56 = vld [vmem:[#allocation8 + $0x8] sm:$0xff] }
 0x77e   :  { %658 = vmatpush.bf16.msra.mxu3 %v1043_v56 }
 0x77f   :  { %1109 = vtanh.f32 %v483_v57  ;;  %v985_v60 = vmul.f32 -1.442695, %v483_v57  ;;  %v1042_v57 = vld [vmem:[#allocation8] sm:$0xff] }
 0x781   :  { %1111 = vpow2.f32 %v985_v60 }
 0x782   :  { %659 = vmatpush.bf16.msra.mxu3 %v1042_v57 }
 0x784   :  { %v481_v58 = vpop.f32.mrf.mxu1 }
 0x785   :  { %v1110_v59 = vpop.eup %1109 }
 0x786   :  { %506 = vrot.lane.b32.xlu0 %v1110_v59, %s1252_s26 }
 0x787   :  { %v1112_v61 = vpop.eup %1111 }
 0x788   :  { %v487_v62 = vadd.f32 1.0, %v1112_v61 }
 0x78a   :  { %1113 = vrcp.f32 %v487_v62  ;;  %v499_v5 = vand.u32 2147483648, %v487_v62  ;;  %vm493_vm14 = vweird.f32 %v487_v62  ;;  %v497_v6 = vand.u32 2147483647, %v487_v62 }
 0x78c   :  { %v500_v9 = vor.u32 1.1754944e-38, %v499_v5  ;;  %vm498_vm1 = vcmp.eq.f32.partialorder %v497_v6, 8.507059e+37 }
 0x790   :  { %v1114_v63 = vpop.eup %1113 }
 0x791   :  { %v489_v1 = vmul.f32 %v1114_v63, %v487_v62  ;;  %vm494_vm13 = vweird.f32 %v1114_v63  ;;  %v628_v62 = vunpack.c.h.bf16 %v536_v30 }
 0x792   :  { %vm495_vm15 = vmor %vm493_vm14, %vm494_vm13 }
 0x793   :  { %v490_v2 = vsub.f32 1.0, %v489_v1 }
 0x795   :  { %v491_v3 = vmul.f32 %v1114_v63, %v490_v2 }
 0x797   :  { %v492_v4 = vadd.f32 %v1114_v63, %v491_v3 }
 0x799   :  { %v496_v7 = vsel %vm495_vm15, %v1114_v63, %v492_v4 }
 0x79a   :  { %v501_v12 = vsel %vm498_vm1, %v500_v9, %v496_v7 }
 0x79b   :  { %v504_v14 = vmul.f32 %v501_v12, %v423_v47 }
 0x7f8   :  { %v507_v11 = vpop.permute.xlu0 %506 }
 0x7f9   :  { %v509_v13 = vmul.f32 %v507_v11, %v501_v12 }
 0x7fb   :  { %511 = vrot.lane.b32.xlu1 %v509_v13, %s1257_s2 }
 0x86d   :  { %v512_v15 = vpop.permute.xlu1 %511 }
 0x86e   :  { %v514_v16 = vadd.f32 %v512_v15, %v504_v14 }
 0x870   :  { %1115 = vtanh.f32 %v514_v16 }
 0x876   :  { %v1116_v17 = vpop.eup %1115 }
 0x877   :  { %517 = vrot.lane.b32.xlu2 %v1116_v17, %s1252_s26 }
 0x8d1   :  { %v518_v21 = vpop.permute.xlu2 %517 }
 0x8d2   :  { %v1356_v22 = vmul.f32 %v518_v21, %v501_v12 }
 0x8d4   :  { %v538_v23 = vpack.c.bf16 %v1356_v22, %v1356_v22 }
 0x8d6   :  { %544 = vrot.lane.b32.xlu0 %v538_v23, %s1257_s2 }
 0x948   :  { %v545_v29 = vpop.permute.xlu0 %544 }
 0x949   :  { %994 = vmatmul.msk.bf16.vlgmr.msrb.gmra.mxu2 %vm117_vm0, %v545_v29 }
 0x9cc   :  { %v570_v32 = vpop.f32.mrf.mxu2 }
 0x9cd   :  { %v574_v33 = vadd.f32 %v570_v32, %v537_v31  ;;  %v718_v32 = vld [vmem:[#allocation2 + $0x18] sm:$0xff]  }
 0x9cf   :  { %1117 = vtanh.f32 %v574_v33  ;;  %v995_v36 = vmul.f32 -1.442695, %v574_v33  ;;  %v719_v33 = vunpack.c.l.bf16 %v718_v32 }
 0x9d1   :  { %1119 = vpow2.f32 %v995_v36 }
 0x9d4   :  { %v572_v34 = vpop.f32.mrf.mxu2 }
 0x9d5   :  { %v1118_v35 = vpop.eup %1117 }
 0x9d6   :  { %597 = vrot.lane.b32.xlu1 %v1118_v35, %s1252_s26 }
 0x9d7   :  { %v1120_v37 = vpop.eup %1119 }
 0x9d8   :  { %v578_v38 = vadd.f32 1.0, %v1120_v37 }
 0x9da   :  { %1121 = vrcp.f32 %v578_v38  ;;  %v590_v44 = vand.u32 2147483648, %v578_v38  ;;  %vm584_vm3 = vweird.f32 %v578_v38  ;;  %v588_v45 = vand.u32 2147483647, %v578_v38 }
 0x9dc   :  { %v591_v47 = vor.u32 1.1754944e-38, %v590_v44  ;;  %vm589_vm5 = vcmp.eq.f32.partialorder %v588_v45, 8.507059e+37 }
 0x9e0   :  { %v1122_v8 = vpop.eup %1121 }
 0x9e1   :  { %v580_v39 = vmul.f32 %v1122_v8, %v578_v38  ;;  %vm585_vm2 = vweird.f32 %v1122_v8 }
 0x9e2   :  { %vm586_vm4 = vmor %vm584_vm3, %vm585_vm2 }
 0x9e3   :  { %v581_v41 = vsub.f32 1.0, %v580_v39 }
 0x9e5   :  { %v582_v42 = vmul.f32 %v1122_v8, %v581_v41 }
 0x9e7   :  { %v583_v43 = vadd.f32 %v1122_v8, %v582_v42 }
 0x9e9   :  { %v587_v46 = vsel %vm586_vm4, %v1122_v8, %v583_v43 }
 0x9ea   :  { %v592_v49 = vsel %vm589_vm5, %v591_v47, %v587_v46 }
 0x9eb   :  { %v595_v51 = vmul.f32 %v592_v49, %v514_v16 }
 0xa48   :  { %v598_v48 = vpop.permute.xlu1 %597 }
 0xa49   :  { %v600_v50 = vmul.f32 %v598_v48, %v592_v49 }
 0xa4b   :  { %602 = vrot.lane.b32.xlu2 %v600_v50, %s1257_s2 }
 0xaa5   :  { %v603_v53 = vpop.permute.xlu2 %602 }
 0xaa6   :  { %v605_v54 = vadd.f32 %v603_v53, %v595_v51 }
 0xaa8   :  { %1123 = vtanh.f32 %v605_v54 }
 0xaae   :  { %v1124_v55 = vpop.eup %1123 }
 0xaaf   :  { %608 = vrot.lane.b32.xlu0 %v1124_v55, %s1252_s26 }
 0xb21   :  { %v609_v58 = vpop.permute.xlu0 %608 }
 0xb22   :  { %v1367_v59 = vmul.f32 %v609_v58, %v592_v49  ;;  %v1047_v58 = vld [vmem:[#allocation8 + $0x8] sm:$0xff] }
 0xb23   :  { %840 = vmatpush.bf16.msra.mxu2 %v1047_v58 }
 0xb24   :  { %v629_v60 = vpack.c.bf16 %v1367_v59, %v1367_v59 }
 0xb26   :  { %635 = vrot.lane.b32.xlu1 %v629_v60, %s1257_s2  ;;  %v1046_v60 = vld [vmem:[#allocation8] sm:$0xff] }
 0xb27   :  { %841 = vmatpush.bf16.msra.mxu2 %v1046_v60 }
 0xb98   :  { %v636_v61 = vpop.permute.xlu1 %635 }
 0xb99   :  { %1004 = vmatmul.msk.bf16.vlgmr.msra.gmra.mxu3 %vm117_vm0, %v636_v61 }
 0xc1c   :  { %v661_v63 = vpop.f32.mrf.mxu3 }
 0xc1d   :  { %v665_v1 = vadd.f32 %v661_v63, %v628_v62 }
 0xc1f   :  { %1125 = vtanh.f32 %v665_v1  ;;  %v1005_v4 = vmul.f32 -1.442695, %v665_v1  ;;  %v1395_v1 = vld [vmem:[%s1457_s4] sm:$0xff]  ;;  %s1258_s4 = smov [#allocation9]  }
 0xc20   :  { %vm430_vm14 = vcmp.gt.s32.totalorder %v1395_v1, 2  ;;  %vm248_vm15 = vcmp.gt.s32.totalorder %v1395_v1, 0  ;;  %vm521_vm1 = vcmp.gt.s32.totalorder %v1395_v1, 3  ;;  %s903_s11 = sshll.u32 %s1258_s4, 4  ;;  %s904_s11 = int_to_ptr.vmem [resolvable:$true] %s903_s11 }
 0xc21   :  { %1127 = vpow2.f32 %v1005_v4  ;;  %v810_v4 = vunpack.c.h.bf16 %v718_v32 }
 0xc24   :  { %v663_v2 = vpop.f32.mrf.mxu3 }
 0xc25   :  { %v1126_v3 = vpop.eup %1125  ;;  %v431_v2 = vsel %vm430_vm14, 1, %v1256_v0 }
 0xc26   :  { %688 = vrot.lane.b32.xlu2 %v1126_v3, %s1252_s26 }
 0xc27   :  { %v1128_v5 = vpop.eup %1127 }
 0xc28   :  { %v669_v6 = vadd.f32 1.0, %v1128_v5 }
 0xc2a   :  { %1129 = vrcp.f32 %v669_v6  ;;  %v681_v14 = vand.u32 2147483648, %v669_v6  ;;  %vm675_vm7 = vweird.f32 %v669_v6  ;;  %v679_v15 = vand.u32 2147483647, %v669_v6 }
 0xc2c   :  { %v682_v17 = vor.u32 1.1754944e-38, %v681_v14  ;;  %vm680_vm9 = vcmp.eq.f32.partialorder %v679_v15, 8.507059e+37 }
 0xc30   :  { %v1130_v7 = vpop.eup %1129 }
 0xc31   :  { %v671_v9 = vmul.f32 %v1130_v7, %v669_v6  ;;  %vm676_vm6 = vweird.f32 %v1130_v7 }
 0xc32   :  { %vm677_vm8 = vmor %vm675_vm7, %vm676_vm6  ;;  %vm339_vm6 = vcmp.gt.s32.totalorder %v1395_v1, 1 }
 0xc33   :  { %v672_v11 = vsub.f32 1.0, %v671_v9  ;;  %v340_v32 = vsel %vm339_vm6, 1, %v1256_v0 }
 0xc35   :  { %v673_v12 = vmul.f32 %v1130_v7, %v672_v11  ;;  %v249_v11 = vsel %vm248_vm15, 1, %v1256_v0 }
 0xc37   :  { %v674_v13 = vadd.f32 %v1130_v7, %v673_v12  ;;  %v522_v12 = vsel %vm521_vm1, 1, %v1256_v0 }
 0xc39   :  { %v678_v16 = vsel %vm677_vm8, %v1130_v7, %v674_v13  ;;  %vm612_vm8 = vcmp.gt.s32.totalorder %v1395_v1, 4 }
 0xc3a   :  { %v683_v19 = vsel %vm680_vm9, %v682_v17, %v678_v16 }
 0xc3b   :  { %v686_v21 = vmul.f32 %v683_v19, %v605_v54 }
 0xc80   :  { %v689_v18 = vpop.permute.xlu2 %688 }
 0xc81   :  { %v691_v20 = vmul.f32 %v689_v18, %v683_v19 }
 0xc83   :  { %693 = vrot.lane.b32.xlu0 %v691_v20, %s1257_s2 }
 0xcf5   :  { %v694_v23 = vpop.permute.xlu0 %693 }
 0xcf6   :  { %v696_v24 = vadd.f32 %v694_v23, %v686_v21 }
 0xcf8   :  { %1131 = vtanh.f32 %v696_v24 }
 0xcfe   :  { %v1132_v25 = vpop.eup %1131 }
 0xcff   :  { %699 = vrot.lane.b32.xlu1 %v1132_v25, %s1252_s26 }
 0xd71   :  { %v700_v28 = vpop.permute.xlu1 %699 }
 0xd72   :  { %v1376_v29 = vmul.f32 %v700_v28, %v683_v19 }
 0xd74   :  { %v720_v30 = vpack.c.bf16 %v1376_v29, %v1376_v29 }
 0xd76   :  { %726 = vrot.lane.b32.xlu2 %v720_v30, %s1257_s2 }
 0xdd0   :  { %v727_v31 = vpop.permute.xlu2 %726 }
 0xdd1   :  { %1014 = vmatmul.msk.bf16.vlgmr.msra.gmra.mxu1 %vm117_vm0, %v727_v31 }
 0xe4e   :  { %v752_v34 = vpop.f32.mrf.mxu1 }
 0xe4f   :  { %v756_v35 = vadd.f32 %v752_v34, %v719_v33 }
 0xe51   :  { %1133 = vtanh.f32 %v756_v35  ;;  %v1015_v38 = vmul.f32 -1.442695, %v756_v35 }
 0xe53   :  { %1135 = vpow2.f32 %v1015_v38 }
 0xe56   :  { %v754_v36 = vpop.f32.mrf.mxu1 }
 0xe57   :  { %v1134_v37 = vpop.eup %1133  ;;  %v613_v36 = vsel %vm612_vm8, 1, %v1256_v0 }
 0xe58   :  { %779 = vrot.lane.b32.xlu0 %v1134_v37, %s1252_s26 }
 0xe59   :  { %v1136_v8 = vpop.eup %1135 }
 0xe5a   :  { %v760_v39 = vadd.f32 1.0, %v1136_v8 }
 0xe5c   :  { %1137 = vrcp.f32 %v760_v39  ;;  %v772_v46 = vand.u32 2147483648, %v760_v39  ;;  %vm766_vm11 = vweird.f32 %v760_v39  ;;  %v770_v47 = vand.u32 2147483647, %v760_v39 }
 0xe5e   :  { %v773_v49 = vor.u32 1.1754944e-38, %v772_v46  ;;  %vm771_vm13 = vcmp.eq.f32.partialorder %v770_v47, 8.507059e+37 }
 0xe62   :  { %v1138_v41 = vpop.eup %1137 }
 0xe63   :  { %v762_v42 = vmul.f32 %v1138_v41, %v760_v39  ;;  %vm767_vm10 = vweird.f32 %v1138_v41 }
 0xe64   :  { %vm768_vm12 = vmor %vm766_vm11, %vm767_vm10  ;;  %vm794_vm10 = vcmp.gt.s32.totalorder %v1395_v1, 6 }
 0xe65   :  { %v763_v43 = vsub.f32 1.0, %v762_v42 }
 0xe67   :  { %v764_v44 = vmul.f32 %v1138_v41, %v763_v43 }
 0xe69   :  { %v765_v45 = vadd.f32 %v1138_v41, %v764_v44 }
 0xe6b   :  { %v769_v48 = vsel %vm768_vm12, %v1138_v41, %v765_v45  ;;  %vm885_vm12 = vcmp.gt.s32.totalorder %v1395_v1, 7 }
 0xe6c   :  { %v774_v51 = vsel %vm771_vm13, %v773_v49, %v769_v48  ;;  %v886_v46 = vsel %vm885_vm12, 1, %v1256_v0 }
 0xe6d   :  { %v777_v54 = vmul.f32 %v774_v51, %v696_v24 }
 0xeca   :  { %v780_v50 = vpop.permute.xlu0 %779 }
 0xecb   :  { %v782_v53 = vmul.f32 %v780_v50, %v774_v51 }
 0xecd   :  { %784 = vrot.lane.b32.xlu1 %v782_v53, %s1257_s2 }
 0xf3f   :  { %v785_v55 = vpop.permute.xlu1 %784 }
 0xf40   :  { %v1384_v56 = vadd.f32 %v785_v55, %v777_v54 }
 0xf42   :  { %1139 = vtanh.f32 %v1384_v56 }
 0xf48   :  { %v1140_v57 = vpop.eup %1139 }
 0xf49   :  { %790 = vrot.lane.b32.xlu2 %v1140_v57, %s1252_s26 }
 0xfa3   :  { %v791_v61 = vpop.permute.xlu2 %790 }
 0xfa4   :  { %v1388_v62 = vmul.f32 %v791_v61, %v774_v51 }
 0xfa6   :  { %v811_v63 = vpack.c.bf16 %v1388_v62, %v1388_v62 }
 0xfa8   :  { %817 = vrot.lane.b32.xlu0 %v811_v63, %s1257_s2 }
 0xfb0   :  { %433 = vperm.xlu0 %1083, %v431_v2  }
0x101a   :  { %v818_v3 = vpop.permute.xlu0 %817 }
0x101b   :  { %1024 = vmatmul.msk.bf16.vlgmr.msra.gmra.mxu2 %vm117_vm0, %v818_v3  ;;  %vm703_vm0 = vcmp.gt.s32.totalorder %v1395_v1, 5 }
0x101c   :  { %v704_v13 = vsel %vm703_vm0, 1, %v1256_v0  ;;  %vm260_vm0 = vcmask 257024  }
0x1022   :  { %v434_v45 = vpop.permute.xlu0 %433 }
0x1023   :  { %vm435_vm14 = vcmp.eq.s32.totalorder %v434_v45, 1 }
0x1024   :  { %v436_v50 = vsel %vm435_vm14, %v1346_v52, 0.0 }
0x1025   :  { %v437_v51 = vpack.c.bf16 %v436_v50, %v436_v50 }
0x109e   :  { %v843_v5 = vpop.f32.mrf.mxu2 }
0x109f   :  { %v847_v6 = vadd.f32 %v843_v5, %v810_v4 }
0x10a1   :  { %1141 = vtanh.f32 %v847_v6  ;;  %v1025_v14 = vmul.f32 -1.442695, %v847_v6 }
0x10a3   :  { %1143 = vpow2.f32 %v1025_v14 }
0x10a6   :  { %v845_v7 = vpop.f32.mrf.mxu2 }
0x10a7   :  { %v1142_v9 = vpop.eup %1141 }
0x10a8   :  { %870 = vrot.lane.b32.xlu1 %v1142_v9, %s1252_s26 }
0x10a9   :  { %v1144_v15 = vpop.eup %1143 }
0x10aa   :  { %v851_v16 = vadd.f32 1.0, %v1144_v15 }
0x10ac   :  { %1145 = vrcp.f32 %v851_v16  ;;  %v863_v23 = vand.u32 2147483648, %v851_v16  ;;  %vm857_vm3 = vweird.f32 %v851_v16  ;;  %v861_v24 = vand.u32 2147483647, %v851_v16 }
0x10ae   :  { %v864_v26 = vor.u32 1.1754944e-38, %v863_v23  ;;  %vm862_vm5 = vcmp.eq.f32.partialorder %v861_v24, 8.507059e+37 }
0x10b0   :  { %251 = vperm.xlu1 %1081, %v249_v11  }
0x10b2   :  { %v1146_v17 = vpop.eup %1145 }
0x10b3   :  { %v853_v18 = vmul.f32 %v1146_v17, %v851_v16  ;;  %vm858_vm2 = vweird.f32 %v1146_v17 }
0x10b4   :  { %vm859_vm4 = vmor %vm857_vm3, %vm858_vm2 }
0x10b5   :  { %v854_v19 = vsub.f32 1.0, %v853_v18 }
0x10b7   :  { %v855_v20 = vmul.f32 %v1146_v17, %v854_v19 }
0x10b8   :  { %524 = vperm.xlu1 %1081, %v522_v12  }
0x10b9   :  { %v856_v21 = vadd.f32 %v1146_v17, %v855_v20 }
0x10bb   :  { %v860_v25 = vsel %vm859_vm4, %v1146_v17, %v856_v21 }
0x10bc   :  { %v1408_v28 = vsel %vm862_vm5, %v864_v26, %v860_v25 }
0x10bd   :  { %v868_v8 = vmul.f32 %v1408_v28, %v1384_v56 }
0x10c0   :  { %706 = vperm.xlu1 %1081, %v704_v13  }
0x111a   :  { %v871_v27 = vpop.permute.xlu1 %870 }
0x111b   :  { %v873_v30 = vmul.f32 %v871_v27, %v1408_v28 }
0x111d   :  { %875 = vrot.lane.b32.xlu2 %v873_v30, %s1257_s2 }
0x1122   :  { %v252_v31 = vpop.permute.xlu1 %251 }
0x1123   :  { %vm253_vm7 = vcmp.eq.s32.totalorder %v252_v31, 1 }
0x1124   :  { %v254_v33 = vsel %vm253_vm7, %v1322_v40, 0.0  ;;  %v795_v40 = vsel %vm794_vm10, 1, %v1256_v0 }
0x1125   :  { %v255_v34 = vpack.c.bf16 %v254_v33, %v254_v33  ;;  %342 = vperm.xlu2 %1082, %v340_v32  }
0x1127   :  { %257 = vrot.lane.b32.xlu1 %v255_v34, %s1257_s2 }
0x112a   :  { %v525_v35 = vpop.permute.xlu1 %524 }
0x112b   :  { %vm526_vm9 = vcmp.eq.s32.totalorder %v525_v35, 1 }
0x112c   :  { %v527_v37 = vsel %vm526_vm9, %v1356_v22, 0.0 }
0x112d   :  { %v528_v38 = vpack.c.bf16 %v527_v37, %v527_v37  ;;  %615 = vperm.xlu2 %1082, %v613_v36  }
0x112f   :  { %530 = vrot.lane.b32.xlu1 %v528_v38, %s1257_s2 }
0x1135   :  { %797 = vperm.xlu2 %1082, %v795_v40  }
0x1177   :  { %v876_v39 = vpop.permute.xlu2 %875 }
0x1178   :  { %v878_v41 = vadd.f32 %v876_v39, %v868_v8 }
0x117a   :  { %1147 = vtanh.f32 %v878_v41 }
0x117f   :  { %v343_v42 = vpop.permute.xlu2 %342 }
0x1180   :  { %v1148_v43 = vpop.eup %1147  ;;  %vm344_vm11 = vcmp.eq.s32.totalorder %v343_v42, 1 }
0x1181   :  { %v345_v22 = vsel %vm344_vm11, %v1333_v10, 0.0  ;;  %881 = vrot.lane.b32.xlu0 %v1148_v43, %s1252_s26  ;;  %v707_v10 = vpop.permute.xlu1 %706 }
0x1182   :  { %v346_v44 = vpack.c.bf16 %v345_v22, %v345_v22  ;;  %vm708_vm1 = vcmp.eq.s32.totalorder %v707_v10, 1 }
0x1183   :  { %v709_v55 = vsel %vm708_vm1, %v1376_v29, 0.0 }
0x1184   :  { %348 = vrot.lane.b32.xlu2 %v346_v44, %s1257_s2 }
0x1187   :  { %v616_v47 = vpop.permute.xlu2 %615 }
0x1188   :  { %vm617_vm13 = vcmp.eq.s32.totalorder %v616_v47, 1 }
0x1189   :  { %v618_v48 = vsel %vm617_vm13, %v1367_v59, 0.0  ;;  %888 = vperm.xlu0 %1083, %v886_v46   ;;  %v710_v59 = vpack.c.bf16 %v709_v55, %v709_v55 }
0x118a   :  { %v619_v49 = vpack.c.bf16 %v618_v48, %v618_v48 }
0x118c   :  { %621 = vrot.lane.b32.xlu2 %v619_v49, %s1257_s2 }
0x118f   :  { %v798_v53 = vpop.permute.xlu2 %797 }
0x1190   :  { %vm799_vm15 = vcmp.eq.s32.totalorder %v798_v53, 1 }
0x1191   :  { %v800_v54 = vsel %vm799_vm15, %v1388_v62, 0.0  ;;  %439 = vrot.lane.b32.xlu0 %v437_v51, %s1257_s2 }
0x1192   :  { %v801_v0 = vpack.c.bf16 %v800_v54, %v800_v54 }
0x1194   :  { %803 = vrot.lane.b32.xlu1 %v801_v0, %s1257_s2 }
0x1199   :  { %v258_v56 = vpop.permute.xlu1 %257  ;;  %712 = vrot.lane.b32.xlu0 %v710_v59, %s1257_s2 }
0x119a   :  { %261 = vst.msk [vmem:[#allocation9] sm:$0xf] %vm260_vm0, %v258_v56 }
0x11a1   :  { %v531_v52 = vpop.permute.xlu1 %530 }
0x11a2   :  { %534 = vst.msk [vmem:[#allocation9 + $0xc] sm:$0xf] %vm260_vm0, %v531_v52 }
0x11de   :  { %v349_v57 = vpop.permute.xlu2 %348 }
0x11df   :  { %352 = vst.msk [vmem:[#allocation9 + $0x4] sm:$0xf] %vm260_vm0, %v349_v57 }
0x11e6   :  { %v622_v58 = vpop.permute.xlu2 %621 }
0x11e7   :  { %625 = vst.msk [vmem:[#allocation9 + $0x10] sm:$0xf] %vm260_vm0, %v622_v58 }
0x11f3   :  { %v882_v60 = vpop.permute.xlu0 %881 }
0x11f4   :  { %v884_v29 = vmul.f32 %v882_v60, %v1408_v28 }
0x11fb   :  { %v889_v61 = vpop.permute.xlu0 %888 }
0x11fc   :  { %vm890_vm2 = vcmp.eq.s32.totalorder %v889_v61, 1 }
0x11fd   :  { %v891_v62 = vsel %vm890_vm2, %v884_v29, 0.0 }
0x11fe   :  { %v892_v63 = vpack.c.bf16 %v891_v62, %v891_v62 }
0x1200   :  { %894 = vrot.lane.b32.xlu2 %v892_v63, %s1257_s2 }
0x1203   :  { %v440_v1 = vpop.permute.xlu0 %439 }
0x1204   :  { %443 = vst.msk [vmem:[#allocation9 + $0x8] sm:$0xf] %vm260_vm0, %v440_v1 }
0x1206   :  { %v804_v2 = vpop.permute.xlu1 %803 }
0x1207   :  { %807 = vst.msk [vmem:[#allocation9 + $0x18] sm:$0xf] %vm260_vm0, %v804_v2 }
0x120b   :  { %v713_v3 = vpop.permute.xlu0 %712 }
0x120c   :  { %716 = vst.msk [vmem:[#allocation9 + $0x14] sm:$0xf] %vm260_vm0, %v713_v3 }
0x125a   :  { %v895_v4 = vpop.permute.xlu2 %894 }
0x125b   :  { %898 = vst.msk [vmem:[#allocation9 + $0x1c] sm:$0xf] %vm260_vm0, %v895_v4 }
0x125c   :  { %911 = dma.vmem_to_hbm [thread:$0]  %s904_s11, 512, %s906_s14, [#allocation5], %s1252_s26, %s1252_s26, %s1253_s27  }
0x125d   :  { %1249 = dma.done.wait [#allocation5], 512  }
0x125e   :  { %1250 = vsyncadd [#allocation5], 4294966784 }
0x125f   :  { %916 = vsyncpa [#allocation4], 1 }
0x1260   :  { %917 = vsyncpa [#allocation7], 1 }
0x1261   :  { %918 = vsyncpa [#allocation5], 1 }

</bundles_post_ra>
